<compile_context>
chip_gen: v6e
topology: v6e:2x2x1
jax: 0.10.0
libtpu: 0.0.40
codegen_flags: <defaults>
</compile_context>

<pallas_src>
import functools

import jax
import jax.numpy as jnp
from jax.experimental import pallas as pl
from jax.experimental.pallas import tpu as pltpu

LANE = 128
SUBLANE = 8
NEG_BIG = -1e30
ONEHOT_VOCAB_MAX = 512        # in-kernel one-hot gather only for small vocabularies


def _round_up(x, m):
    return (x + m - 1) // m * m


def _vmem_capacity_bytes():
    try:
        return int(pltpu.get_tpu_info().vmem_capacity_bytes)
    except Exception:
        return 64 * 1024 * 1024   # conservative fallback: v7x per-TensorCore VMEM


# ----------------------------------------------------------------------------
# Kernel: one batch block.
#   [one-hot gather ->] chunked conv matmul -> masked running max -> linear
# ----------------------------------------------------------------------------
def _charcnn_kernel(max_fs, l_out, tq, use_onehot, use_tap_loop, cdt, *refs):
    if use_onehot:
        (ids_ref, table_ref, w_ref, mask_ref, cb_ref, lw_ref, lb_ref,
         out_ref) = refs
    else:
        (emb_ref, w_ref, mask_ref, cb_ref, lw_ref, lb_ref, out_ref) = refs

    tb = out_ref.shape[0]
    c_pad = w_ref.shape[1]
    e = w_ref.shape[0] // max_fs
    width = tq + max_fs - 1                       # activation rows per l_out chunk

    def load_x(start):
        # (TB, width, E) activation rows [start, start+width), compute dtype.
        if use_onehot:
            v_pad = table_ref.shape[0]
            ids = ids_ref[:, start:start + width]                      # (TB, width) i32
            iota_v = jax.lax.broadcasted_iota(jnp.int32, (tb, width, v_pad), 2)
            one_hot = (ids[:, :, None] == iota_v).astype(cdt)
            rows = jnp.dot(one_hot.reshape(tb * width, v_pad), table_ref[...],
                           preferred_element_type=jnp.float32)
            return rows.astype(cdt).reshape(tb, width, e)
        return emb_ref[:, start:start + width, :]

    pooled = None
    for q in range(l_out // tq):                  # static (unrolled) chunk loop
        start = q * tq
        x = load_x(start)
        if use_tap_loop:
            # E >= 128: per-tap accumulation, no lane-concat im2col replication.
            acc = jnp.zeros((tb * tq, c_pad), jnp.float32)
            for k in range(max_fs):
                xk = x[:, k:k + tq, :].reshape(tb * tq, e)
                acc = acc + jnp.dot(xk, w_ref[k * e:(k + 1) * e, :],
                                    preferred_element_type=jnp.float32)
        else:
            # Small E: fused im2col (stays in compute dtype) + single MXU matmul.
            cols = jnp.concatenate([x[:, k:k + tq, :] for k in range(max_fs)],
                                   axis=-1)
            acc = jnp.dot(cols.reshape(tb * tq, max_fs * e), w_ref[...],
                          preferred_element_type=jnp.float32)
        # Additive 0/-1e30 mask (precomputed) handles shorter filters and
        # l_out padding; then partial max -> running max.
        acc = acc.reshape(tb, tq, c_pad) + mask_ref[start:start + tq, :][None]
        cmax = jnp.max(acc, axis=1)               # (TB, C_pad) f32
        pooled = cmax if pooled is None else jnp.maximum(pooled, cmax)

    pooled = pooled + cb_ref[...]                 # bias after pool: max(x+b)=max(x)+b
    # TODO(synk): nn.Dropout(p=0.5) is identity at inference; training-mode
    # stochastic dropout (pltpu.prng_seed / prng_random_bits) is not implemented.
    out = jnp.dot(pooled.astype(cdt), lw_ref[...],
                  preferred_element_type=jnp.float32) + lb_ref[...]
    out_ref[...] = out.astype(out_ref.dtype)


# ----------------------------------------------------------------------------
# Wrapper: geometry, VMEM-aware block sizing, weight fusion, pallas_call.
# ----------------------------------------------------------------------------
def charcnn_forward(data, params, filter_sizes, compute_dtype=jnp.bfloat16):
    emb_table = params["embed"]                   # (V, E)
    B, L = data.shape
    V, E = emb_table.shape
    n = len(filter_sizes)
    C = params["conv_w"][0].shape[0]              # out_channel_size
    C_total = C * n
    O = params["lin_w"].shape[0]                  # output_size
    max_fs = max(filter_sizes)
    min_fs = min(filter_sizes)
    if L < max_fs:
        raise ValueError(f"sequence length {L} < largest filter size {max_fs}")

    cdt = jnp.dtype(compute_dtype)                # f32 available for exact parity
    bpe = cdt.itemsize

    # ---- output-length / chunk geometry -----------------------------------
    l_out0 = _round_up(L - min_fs + 1, SUBLANE)
    TQ = l_out0 if l_out0 <= 256 else 256         # l_out chunk (bounds conv acc)
    l_out = _round_up(l_out0, TQ)
    L_pad = l_out + max_fs - 1

    C_pad = _round_up(max(C_total, 1), LANE)
    O_pad = _round_up(max(O, 1), LANE)
    V_pad = _round_up(V, LANE)
    E_eff = _round_up(E, LANE)                    # lane padding of E in VMEM

    use_onehot = V_pad <= ONEHOT_VOCAB_MAX        # in-kernel gather path
    use_tap_loop = E >= LANE                      # skip concat-im2col for big E

    # ---- generation-aware VMEM budgeting ----------------------------------
    vmem_cap = _vmem_capacity_bytes()
    resident = 2 * (max_fs * E * C_pad * bpe      # fused conv weights
                    + l_out * C_pad * 4           # additive pool mask
                    + C_pad * 4 + O_pad * 4       # biases
                    + C_pad * O_pad * bpe)        # linear weights
    if use_onehot:
        resident += 2 * V_pad * E_eff * bpe       # embedding table in VMEM
    budget = int(vmem_cap * 0.55) - resident

    def _block_vmem_bytes(tb):
        width = TQ + max_fs - 1
        ws = 2 * tb * O_pad * 4                                   # output block
        ws += int(2.5 * tb * TQ * C_pad * 4)                      # acc + mask/max temps
        if use_onehot:
            ws += 2 * tb * _round_up(L_pad, LANE) * 4             # token ids
            ws += tb * width * V_pad * bpe                        # one-hot chunk
            ws += tb * width * E_eff * (4 + bpe)                  # gathered rows
        else:
            ws += 2 * tb * L_pad * E_eff * bpe                    # emb block (x2 buf)
            ws += tb * width * E_eff * bpe                        # chunk window copy
        if not use_tap_loop:
            ws += tb * TQ * _round_up(max_fs * E, LANE) * bpe     # im2col columns
        return ws

    tb_hi = min(512, _round_up(B, SUBLANE))
    TB = SUBLANE
    cand = SUBLANE
    while cand <= tb_hi:
        if _block_vmem_bytes(cand) <= budget:
            TB = cand
        cand += SUBLANE

    # Keep >= 2 grid steps when B > 8 so ("parallel",) shards across v7x's 2 TCs.
    b8 = _round_up(B, SUBLANE)
    if B > SUBLANE and TB >= b8:
        TB = max(SUBLANE, _round_up(B, 2 * SUBLANE) // 2)
    B_pad = _round_up(B, TB)

    vmem_limit = int(min(vmem_cap * 0.9,
                         max(_block_vmem_bytes(TB) + resident + (8 << 20),
                             32 << 20)))

    # ---- activation inputs -------------------------------------------------
    if use_onehot:
        # Stream 4 B/token ids; gather happens on-chip via one-hot MXU matmul.
        ids_inp = jnp.pad(data.astype(jnp.int32),
                          ((0, B_pad - B), (0, L_pad - L)))
        table_inp = jnp.pad(emb_table, ((0, V_pad - V), (0, 0))).astype(cdt)
        first_inputs = (ids_inp, table_inp)
        first_specs = [pl.BlockSpec((TB, L_pad), lambda b: (b, 0)),
                       pl.BlockSpec((V_pad, E), lambda b: (0, 0))]
    else:
        # TODO(synk): for large vocabularies the embedding gather stays in the
        # wrapper — a vectorized in-kernel gather needs a dynamic_gather /
        # take_along_axis lowering that is not guaranteed, and a per-token
        # scalar loop is slower than the extra HBM round trip at real shapes.
        data_p = jnp.pad(data, ((0, B_pad - B), (0, 0)))
        emb = jnp.take(emb_table.astype(cdt), data_p, axis=0)
        emb = jnp.pad(emb, ((0, 0), (0, L_pad - L), (0, 0)))
        first_inputs = (emb,)
        first_specs = [pl.BlockSpec((TB, L_pad, E), lambda b: (b, 0, 0))]

    # ---- fuse conv weights across taps and filter sizes; build pool mask ---
    w_blocks, b_blocks, m_blocks = [], [], []
    pos = jnp.arange(l_out)
    for i, fs in enumerate(filter_sizes):
        w = params["conv_w"][i]                   # (C, E, fs)
        wt = jnp.transpose(w, (2, 1, 0))          # (fs, E, C)
        wt = jnp.pad(wt, ((0, max_fs - fs), (0, 0), (0, 0)))
        w_blocks.append(wt.reshape(max_fs * E, C))
        b_blocks.append(params["conv_b"][i])
        valid = pos <= (L - fs)
        m = jnp.where(valid[:, None], 0.0, NEG_BIG).astype(jnp.float32)
        m_blocks.append(jnp.broadcast_to(m, (l_out, C)))
    w_fused = jnp.concatenate(w_blocks, axis=1)                       # (max_fs*E, C_total)
    w_fused = jnp.pad(w_fused, ((0, 0), (0, C_pad - C_total))).astype(cdt)
    conv_b = jnp.pad(jnp.concatenate(b_blocks), (0, C_pad - C_total))
    conv_b = conv_b.reshape(1, C_pad).astype(jnp.float32)
    mask = jnp.concatenate(m_blocks, axis=1)                          # (l_out, C_total)
    mask = jnp.pad(mask, ((0, 0), (0, C_pad - C_total))).astype(jnp.float32)

    lin_w = jnp.pad(jnp.transpose(params["lin_w"], (1, 0)),
                    ((0, C_pad - C_total), (0, O_pad - O))).astype(cdt)
    lin_b = jnp.pad(params["lin_b"], (0, O_pad - O)).reshape(1, O_pad)
    lin_b = lin_b.astype(jnp.float32)

    inputs = first_inputs + (w_fused, mask, conv_b, lin_w, lin_b)
    in_specs = first_specs + [
        pl.BlockSpec((max_fs * E, C_pad), lambda b: (0, 0)),
        pl.BlockSpec((l_out, C_pad), lambda b: (0, 0)),
        pl.BlockSpec((1, C_pad), lambda b: (0, 0)),
        pl.BlockSpec((C_pad, O_pad), lambda b: (0, 0)),
        pl.BlockSpec((1, O_pad), lambda b: (0, 0)),
    ]

    flops = (2 * B_pad * l_out * (max_fs * E) * C_pad
             + 2 * B_pad * C_pad * O_pad)
    if use_onehot:
        flops += 2 * B_pad * L_pad * V_pad * E
    bytes_accessed = int(sum(x.size * jnp.dtype(x.dtype).itemsize for x in inputs)
                         + B_pad * O_pad * 4)

    out = pl.pallas_call(
        functools.partial(_charcnn_kernel, max_fs, l_out, TQ,
                          use_onehot, use_tap_loop, cdt),
        out_shape=jax.ShapeDtypeStruct((B_pad, O_pad), jnp.float32),
        grid=(B_pad // TB,),
        in_specs=in_specs,
        out_specs=pl.BlockSpec((TB, O_pad), lambda b: (b, 0)),
        compiler_params=pltpu.CompilerParams(
            dimension_semantics=("parallel",),
            vmem_limit_bytes=vmem_limit),
        cost_estimate=pl.CostEstimate(
            flops=flops, transcendentals=0, bytes_accessed=bytes_accessed),
    )(*inputs)
    return out[:B, :O]


# ----------------------------------------------------------------------------
# Pure-JAX reference (mirrors the PyTorch module, eval mode, f32).
# ----------------------------------------------------------------------------
def charcnn_reference(data, params, filter_sizes):
    emb = params["embed"][data]                   # (B, L, E)
    x = jnp.transpose(emb, (0, 2, 1))             # (B, E, L)  == NCW
    pooled = []
    for i, _fs in enumerate(filter_sizes):
        w = params["conv_w"][i]                   # (C, E, fs)
        b = params["conv_b"][i]
        y = jax.lax.conv_general_dilated(
            x, w, window_strides=(1,), padding="VALID",
            dimension_numbers=("NCH", "OIH", "NCH"))
        y = y + b[None, :, None]
        pooled.append(jnp.max(y, axis=-1))        # (B, C)
    feats = jnp.concatenate(pooled, axis=-1)      # (B, C*n)
    return feats @ params["lin_w"].T + params["lin_b"]


if __name__ == "__main__":
    filter_sizes = [2, 3]
    embed_size = 32          # E
    chars_size = 50          # vocabulary
    output_size = 2          # O
    out_channel_size = 4     # C
    batch = 2
    seq_len = 16             # L

    conv_out_size = out_channel_size * len(filter_sizes)

    key = jax.random.PRNGKey(0)
    keys = jax.random.split(key, 4 + 2 * len(filter_sizes))

    params = {
        "embed": jax.random.normal(keys[0], (chars_size, embed_size),
                                   jnp.float32),
        "conv_w": [jax.random.normal(keys[1 + i],
                                     (out_channel_size, embed_size, fs),
                                     jnp.float32) * 0.1
                   for i, fs in enumerate(filter_sizes)],
        "conv_b": [jax.random.normal(keys[1 + len(filter_sizes) + i],
                                     (out_channel_size,), jnp.float32) * 0.1
                   for i in range(len(filter_sizes))],
        "lin_w": jax.random.normal(keys[-3], (output_size, conv_out_size),
                                   jnp.float32) * 0.1,
        "lin_b": jax.random.normal(keys[-2], (output_size,),
                                   jnp.float32) * 0.1,
    }

    data = jax.random.randint(keys[-1], (batch, seq_len), 0, chars_size,
                              dtype=jnp.int32)

    out = charcnn_forward(data, params, filter_sizes)
    out = jax.block_until_ready(out)

    ref = charcnn_reference(data, params, filter_sizes)
    assert out.shape == (batch, output_size)
    # bf16 matmul operands (f32 accumulation) -> loosened tolerance vs f32 ref.
    assert jnp.allclose(out, ref, atol=5e-2, rtol=5e-2), (out, ref)

    print("KERNEL_OK")
</pallas_src>

<mosaic_0001>
module attributes {stable_mosaic.version = 11 : i64} {
  func.func @_charcnn_kernel(%arg0: i32, %arg1: memref<8x18xi32, #tpu.memory_space<vmem>>, %arg2: memref<128x32xbf16, #tpu.memory_space<vmem>>, %arg3: memref<96x128xbf16, #tpu.memory_space<vmem>>, %arg4: memref<16x128xf32, #tpu.memory_space<vmem>>, %arg5: memref<1x128xf32, #tpu.memory_space<vmem>>, %arg6: memref<128x128xbf16, #tpu.memory_space<vmem>>, %arg7: memref<1x128xf32, #tpu.memory_space<vmem>>, %arg8: memref<8x128xf32, #tpu.memory_space<vmem>>) attributes {dimension_semantics = [#tpu.dimension_semantics<parallel>], iteration_bounds = array<i64: 1>, scalar_prefetch = 0 : i64, scratch_operands = 0 : i64, tpu.core_type = #tpu.core_type<tc>, window_params = [{transform_indices = @transform_0, window_bounds = array<i64: 8, 18>}, {pipeline_mode = #tpu.pipeline_mode<synchronous>, transform_indices = @transform_1, window_bounds = array<i64: 128, 32>}, {pipeline_mode = #tpu.pipeline_mode<synchronous>, transform_indices = @transform_2, window_bounds = array<i64: 96, 128>}, {pipeline_mode = #tpu.pipeline_mode<synchronous>, transform_indices = @transform_3, window_bounds = array<i64: 16, 128>}, {pipeline_mode = #tpu.pipeline_mode<synchronous>, transform_indices = @transform_4, window_bounds = array<i64: 1, 128>}, {pipeline_mode = #tpu.pipeline_mode<synchronous>, transform_indices = @transform_5, window_bounds = array<i64: 128, 128>}, {pipeline_mode = #tpu.pipeline_mode<synchronous>, transform_indices = @transform_6, window_bounds = array<i64: 1, 128>}, {transform_indices = @transform_7, window_bounds = array<i64: 8, 128>}]} {
    %c0 = arith.constant 0 : index
    %c0_0 = arith.constant 0 : index
    %0 = vector.load %arg1[%c0, %c0_0] : memref<8x18xi32, #tpu.memory_space<vmem>>, vector<8x18xi32>
    %1 = tpu.iota {dimensions = array<i32: 2>} : vector<8x18x128xi32>
    %2 = vector.shape_cast %0 : vector<8x18xi32> to vector<8x18x1xi32>
    %3 = vector.broadcast %2 : vector<8x18x1xi32> to vector<8x18x128xi32>
    %4 = arith.cmpi eq, %3, %1 : vector<8x18x128xi32>
    %5 = arith.extui %4 : vector<8x18x128xi1> to vector<8x18x128xi32>
    %6 = arith.sitofp %5 : vector<8x18x128xi32> to vector<8x18x128xf32>
    %7 = arith.truncf %6 : vector<8x18x128xf32> to vector<8x18x128xbf16>
    %8 = vector.shape_cast %7 : vector<8x18x128xbf16> to vector<144x128xbf16>
    %c0_1 = arith.constant 0 : index
    %c0_2 = arith.constant 0 : index
    %9 = vector.load %arg2[%c0_1, %c0_2] : memref<128x32xbf16, #tpu.memory_space<vmem>>, vector<128x32xbf16>
    %cst = arith.constant dense<0.000000e+00> : vector<144x32xf32>
    %10 = tpu.matmul %8, %9, %cst {dimension_numbers = #tpu.dot_dimension_numbers<[1], [0], [0], [1], [0, 0, 1, 1], [], []>} : vector<144x128xbf16>, vector<128x32xbf16>, vector<144x32xf32> -> vector<144x32xf32>
    %11 = arith.truncf %10 : vector<144x32xf32> to vector<144x32xbf16>
    %12 = vector.shape_cast %11 : vector<144x32xbf16> to vector<8x18x32xbf16>
    %13 = vector.extract_strided_slice %12 {offsets = [0, 0, 0], sizes = [8, 16, 32], strides = [1, 1, 1]} : vector<8x18x32xbf16> to vector<8x16x32xbf16>
    %14 = vector.extract_strided_slice %12 {offsets = [0, 1, 0], sizes = [8, 16, 32], strides = [1, 1, 1]} : vector<8x18x32xbf16> to vector<8x16x32xbf16>
    %15 = vector.extract_strided_slice %12 {offsets = [0, 2, 0], sizes = [8, 16, 32], strides = [1, 1, 1]} : vector<8x18x32xbf16> to vector<8x16x32xbf16>
    %16 = tpu.concatenate %13, %14, %15 in 2 : vector<8x16x32xbf16>, vector<8x16x32xbf16>, vector<8x16x32xbf16> -> vector<8x16x96xbf16>
    %17 = vector.shape_cast %16 : vector<8x16x96xbf16> to vector<128x96xbf16>
    %c0_3 = arith.constant 0 : index
    %c0_4 = arith.constant 0 : index
    %18 = vector.load %arg3[%c0_3, %c0_4] : memref<96x128xbf16, #tpu.memory_space<vmem>>, vector<96x128xbf16>
    %cst_5 = arith.constant dense<0.000000e+00> : vector<128x128xf32>
    %19 = tpu.matmul %17, %18, %cst_5 {dimension_numbers = #tpu.dot_dimension_numbers<[1], [0], [0], [1], [0, 0, 1, 1], [], []>} : vector<128x96xbf16>, vector<96x128xbf16>, vector<128x128xf32> -> vector<128x128xf32>
    %20 = vector.shape_cast %19 : vector<128x128xf32> to vector<8x16x128xf32>
    %c0_6 = arith.constant 0 : index
    %c0_7 = arith.constant 0 : index
    %21 = vector.load %arg4[%c0_6, %c0_7] : memref<16x128xf32, #tpu.memory_space<vmem>>, vector<16x128xf32>
    %22 = vector.shape_cast %21 : vector<16x128xf32> to vector<1x16x128xf32>
    %23 = vector.broadcast %22 : vector<1x16x128xf32> to vector<8x16x128xf32>
    %24 = arith.addf %20, %23 : vector<8x16x128xf32>
    %cst_8 = arith.constant dense<0xFF800000> : vector<8x128xf32>
    %25 = vector.multi_reduction <maximumf>, %24, %cst_8 [1] : vector<8x16x128xf32> to vector<8x128xf32>
    %c0_9 = arith.constant 0 : index
    %c0_10 = arith.constant 0 : index
    %26 = vector.load %arg5[%c0_9, %c0_10] : memref<1x128xf32, #tpu.memory_space<vmem>>, vector<1x128xf32>
    %27 = vector.broadcast %26 : vector<1x128xf32> to vector<8x128xf32>
    %28 = arith.addf %25, %27 : vector<8x128xf32>
    %29 = arith.truncf %28 : vector<8x128xf32> to vector<8x128xbf16>
    %c0_11 = arith.constant 0 : index
    %c0_12 = arith.constant 0 : index
    %30 = vector.load %arg6[%c0_11, %c0_12] : memref<128x128xbf16, #tpu.memory_space<vmem>>, vector<128x128xbf16>
    %cst_13 = arith.constant dense<0.000000e+00> : vector<8x128xf32>
    %31 = tpu.matmul %29, %30, %cst_13 {dimension_numbers = #tpu.dot_dimension_numbers<[1], [0], [0], [1], [0, 0, 1, 1], [], []>} : vector<8x128xbf16>, vector<128x128xbf16>, vector<8x128xf32> -> vector<8x128xf32>
    %c0_14 = arith.constant 0 : index
    %c0_15 = arith.constant 0 : index
    %32 = vector.load %arg7[%c0_14, %c0_15] : memref<1x128xf32, #tpu.memory_space<vmem>>, vector<1x128xf32>
    %33 = vector.broadcast %32 : vector<1x128xf32> to vector<8x128xf32>
    %34 = arith.addf %31, %33 : vector<8x128xf32>
    %c0_16 = arith.constant 0 : index
    %c0_17 = arith.constant 0 : index
    %35 = vector.load %arg8[%c0_16, %c0_17] : memref<8x128xf32, #tpu.memory_space<vmem>>, vector<8x128xf32>
    tpu.vector_store %arg8[%c0_16, %c0_17], %34 {strides = array<i32>} : memref<8x128xf32, #tpu.memory_space<vmem>>, vector<8x128xf32>,
    return
  }
  func.func @transform_0(%arg0: i32) -> (i32, i32) {
    %c0_i32 = arith.constant 0 : i32
    %c0_i32_0 = arith.constant 0 : i32
    return %arg0, %c0_i32 : i32, i32
  }
  func.func @transform_1(%arg0: i32) -> (i32, i32) {
    %c0_i32 = arith.constant 0 : i32
    %c0_i32_0 = arith.constant 0 : i32
    %c0_i32_1 = arith.constant 0 : i32
    return %c0_i32, %c0_i32_0 : i32, i32
  }
  func.func @transform_2(%arg0: i32) -> (i32, i32) {
    %c0_i32 = arith.constant 0 : i32
    %c0_i32_0 = arith.constant 0 : i32
    %c0_i32_1 = arith.constant 0 : i32
    return %c0_i32, %c0_i32_0 : i32, i32
  }
  func.func @transform_3(%arg0: i32) -> (i32, i32) {
    %c0_i32 = arith.constant 0 : i32
    %c0_i32_0 = arith.constant 0 : i32
    %c0_i32_1 = arith.constant 0 : i32
    return %c0_i32, %c0_i32_0 : i32, i32
  }
  func.func @transform_4(%arg0: i32) -> (i32, i32) {
    %c0_i32 = arith.constant 0 : i32
    %c0_i32_0 = arith.constant 0 : i32
    %c0_i32_1 = arith.constant 0 : i32
    return %c0_i32, %c0_i32_0 : i32, i32
  }
  func.func @transform_5(%arg0: i32) -> (i32, i32) {
    %c0_i32 = arith.constant 0 : i32
    %c0_i32_0 = arith.constant 0 : i32
    %c0_i32_1 = arith.constant 0 : i32
    return %c0_i32, %c0_i32_0 : i32, i32
  }
  func.func @transform_6(%arg0: i32) -> (i32, i32) {
    %c0_i32 = arith.constant 0 : i32
    %c0_i32_0 = arith.constant 0 : i32
    %c0_i32_1 = arith.constant 0 : i32
    return %c0_i32, %c0_i32_0 : i32, i32
  }
  func.func @transform_7(%arg0: i32) -> (i32, i32) {
    %c0_i32 = arith.constant 0 : i32
    %c0_i32_0 = arith.constant 0 : i32
    return %arg0, %c0_i32 : i32, i32
  }
}

</mosaic_0001>

<bundles_post_ra>
// kernel: tpu_custom_call.1
= control target key start
LH: loop header
LB: loop body
LE: loop exit
PB: predicated region body
PF: predicated region fallthrough
CT: control target
= control target key end

     0   :  { %12 = vsyncpa [#allocation3], 0  ;;  %s4696_s0 = inlined_call_operand.vmem [shape: s32[8,18], index: 0, kind: input, shape index: {}]   ;;  %s4697_s1 = inlined_call_operand.vmem [shape: bf16[128,32], index: 1, kind: input, shape index: {}]   ;;  %s4698_s2 = inlined_call_operand.hbm [shape: bf16[96,128], index: 2, kind: input, shape index: {}]   ;;  %s4699_s3 = inlined_call_operand.vmem [shape: f32[16,128], index: 3, kind: input, shape index: {}]   ;;  %s4700_s4 = inlined_call_operand.vmem [shape: f32[1,128], index: 4, kind: input, shape index: {}]   ;;  %s4701_s5 = inlined_call_operand.vmem [shape: bf16[128,128], index: 5, kind: input, shape index: {}]   ;;  %s4702_s6 = inlined_call_operand.vmem [shape: f32[1,128], index: 6, kind: input, shape index: {}]   ;;  %s4703_s7 = inlined_call_operand.hbm [shape: f32[8,128], index: 7, kind: output, shape index: {}]  }
   0x1   :  { %13 = vsyncpa [#allocation4], 0  ;;  %s3646_s24 = smov [#allocation2]  }
   0x2   :  { %s23_s25 = sshll.u32 %s3646_s24, 4  ;;  %s24_s25 = int_to_ptr.vmem [resolvable:$true] %s23_s25 }
   0x3   :  { %s3610_s26 = scalar_lea.vmem %s24_s25, 768  ;;  %p3615_p1 = scmp.lt.s32.totalorder %s24_s25, %s24_s25 }
   0x4   :  { %p3611_p0 = scmp.ne.s32.totalorder %s24_s25, %s3610_s26  ;;  %p3616_p2 = scmp.lt.s32.totalorder %s3610_s26, %s3610_s26 }
   0x6   :  { %p3617_p3 = por %p3616_p2, %p3615_p1 }
   0x8   :  { %p3618_p4 = pnand %p3617_p3, %p3611_p0 }
   0xa   :  { %3621 = shalt.err (!%p3618_p4)
}
   0xb   :  { %s3647_s27 = smov 64   ;;  %s3648_s28 = smov 4  }
   0xc   :  { %29 = dma.hbm_to_vmem [thread:$0]  %s4698_s2, 768, %s24_s25, [#allocation3], %s3647_s27, %s3647_s27, %s3648_s28  }
   0xd   :  { %3642 = dma.done.wait [#allocation3], 768  }
   0xe   :  { %3643 = vsyncadd [#allocation3], 4294966528  ;;  %v43_v0 = vlaneseq  ;;  %v3649_v1 = vmov 0.0   ;;  %v42_v5 = vld [vmem:[%s4696_s0] sm:$0xff]  ;;  %v3580_v8 = vld [vmem:[%s4697_s1 + $0x38] sm:$0xff]   ;;  %vm3650_vm0 = vmmov 0  }
   0xf   :  { %3472 = vmatprep.subr.bf16.mxu0 %v3649_v1  ;;  %v3581_v10 = vld [vmem:[%s4697_s1 + $0x30] sm:$0xff]   ;;  %v3582_v11 = vld [vmem:[%s4697_s1 + $0x28] sm:$0xff]   ;;  %v3583_v14 = vld [vmem:[%s4697_s1 + $0x20] sm:$0xff]   ;;  %3488 = vmatprep.mubr.msk.bf16.mxu0 %vm3650_vm0, %v3649_v1  ;;  %v3651_v28 = vmov 1966171168   ;;  %s3653_s20 = smov [#allocation5]  }
  0x10   :  { %v3701_v2 = vshrl.u32 %v43_v0, 7  ;;  %3473 = vmatpush3.bf16.msra.mxu0 %v3580_v8  ;;  %v3584_v16 = vld [vmem:[%s4697_s1 + $0x18] sm:$0xff]   ;;  %v3585_v19 = vld [vmem:[%s4697_s1 + $0x10] sm:$0xff]   ;;  %v3586_v21 = vld [vmem:[%s4697_s1 + $0x8] sm:$0xff]   ;;  %v271_v29 = vunpack.c.l.s4 %v3651_v28  ;;  %v3748_v30 = vand.u32 127, %v43_v0  ;;  %s3326_s21 = sshll.u32 %s3653_s20, 4  ;;  %s3327_s21 = int_to_ptr.vmem [resolvable:$true] %s3326_s21 }
  0x11   :  { %3474 = vmatprep.subr.bf16.mxu0 %v3649_v1  ;;  %v3587_v24 = vld [vmem:[%s4697_s1] sm:$0xff]   ;;  %s3652_s1 = smov 32   ;;  %s3622_s22 = scalar_lea.vmem %s3327_s21, 128 }
  0x12   :  { %v62_v3 = vsub.s32 1, %v3701_v2  ;;  %v47_v4 = vsub.s32 0, %v3701_v2  ;;  %v77_v9 = vsub.s32 2, %v3701_v2  ;;  %v92_v13 = vsub.s32 3, %v3701_v2  ;;  %p3623_p5 = scmp.ne.s32.totalorder %s3327_s21, %s3622_s22  ;;  %p3627_p6 = scmp.lt.s32.totalorder %s3327_s21, %s3327_s21 }
  0x13   :  { %v107_v15 = vsub.s32 4, %v3701_v2  ;;  %v122_v20 = vsub.s32 5, %v3701_v2  ;;  %v137_v23 = vsub.s32 6, %v3701_v2  ;;  %v152_v26 = vsub.s32 7, %v3701_v2  ;;  %p3628_p7 = scmp.lt.s32.totalorder %s3622_s22, %s3622_s22 }
  0x14   :  { %v63_v6 = vrot.slane %v42_v5, %v62_v3  ;;  %v48_v7 = vrot.slane %v42_v5, %v47_v4  ;;  %v78_v12 = vrot.slane %v42_v5, %v77_v9  ;;  %3475 = vmatpush3.bf16.msra.mxu0 %v3581_v10  ;;  %v93_v17 = vrot.slane %v42_v5, %v92_v13 }
  0x15   :  { %3476 = vmatprep.subr.bf16.mxu0 %v3649_v1  ;;  %v108_v18 = vrot.slane %v42_v5, %v107_v15  ;;  %v123_v22 = vrot.slane %v42_v5, %v122_v20  ;;  %v138_v25 = vrot.slane %v42_v5, %v137_v23  ;;  %v153_v27 = vrot.slane %v42_v5, %v152_v26  ;;  %p3629_p8 = por %p3628_p7, %p3627_p6 }
  0x16   :  { %65 = vbcast.lane.b32.xlu1 %v63_v6, 256  ;;  %50 = vbcast.lane.b32.xlu0 %v48_v7, 256  ;;  %v272_v33 = vunpack.c.0.s8 %v271_v29 }
  0x17   :  { %p3630_p9 = pnand %p3629_p8, %p3623_p5 }
  0x18   :  { %3477 = vmatpush3.bf16.msra.mxu0 %v3582_v11  ;;  %v3754_v37 = vsub.s32 %v272_v33, %v3701_v2 }
  0x19   :  { %3478 = vmatprep.subr.bf16.mxu0 %v3649_v1 }
  0x1a   :  { %69 = vbcast.lane.b32.xlu1 %v63_v6, 264  ;;  %54 = vbcast.lane.b32.xlu0 %v48_v7, 264 }
  0x1c   :  { %3479 = vmatpush3.bf16.msra.mxu0 %v3583_v14 }
  0x1d   :  { %3480 = vmatprep.subr.bf16.mxu0 %v3649_v1 }
  0x1e   :  { %80 = vbcast.lane.b32.xlu1 %v78_v12, 256  ;;  %58 = vbcast.lane.b32.xlu0 %v48_v7, 272 }
  0x20   :  { %3481 = vmatpush3.bf16.msra.mxu0 %v3584_v16 }
  0x21   :  { %3482 = vmatprep.subr.bf16.mxu0 %v3649_v1 }
  0x22   :  { %73 = vbcast.lane.b32.xlu1 %v63_v6, 272  ;;  %84 = vbcast.lane.b32.xlu0 %v78_v12, 264 }
  0x24   :  { %3483 = vmatpush3.bf16.msra.mxu0 %v3585_v19 }
  0x25   :  { %3484 = vmatprep.subr.bf16.mxu0 %v3649_v1 }
  0x26   :  { %99 = vbcast.lane.b32.xlu1 %v93_v17, 264  ;;  %95 = vbcast.lane.b32.xlu0 %v93_v17, 256 }
  0x28   :  { %3485 = vmatpush3.bf16.msra.mxu0 %v3586_v21 }
  0x29   :  { %3486 = vmatprep.subr.bf16.mxu0 %v3649_v1 }
  0x2a   :  { %88 = vbcast.lane.b32.xlu0 %v78_v12, 272  ;;  %110 = vbcast.lane.b32.xlu1 %v108_v18, 256 }
  0x2c   :  { %3487 = vmatpush3.bf16.msra.mxu0 %v3587_v24 }
  0x2e   :  { %114 = vbcast.lane.b32.xlu0 %v108_v18, 264  ;;  %103 = vbcast.lane.b32.xlu1 %v93_v17, 272 }
  0x32   :  { %125 = vbcast.lane.b32.xlu0 %v123_v22, 256  ;;  %129 = vbcast.lane.b32.xlu1 %v123_v22, 264 }
  0x36   :  { %118 = vbcast.lane.b32.xlu0 %v108_v18, 272  ;;  %140 = vbcast.lane.b32.xlu1 %v138_v25, 256 }
  0x3a   :  { %144 = vbcast.lane.b32.xlu0 %v138_v25, 264  ;;  %133 = vbcast.lane.b32.xlu1 %v123_v22, 272 }
  0x3e   :  { %148 = vbcast.lane.b32.xlu0 %v138_v25, 272  ;;  %155 = vbcast.lane.b32.xlu1 %v153_v27, 256 }
  0x42   :  { %159 = vbcast.lane.b32.xlu0 %v153_v27, 264  ;;  %163 = vbcast.lane.b32.xlu1 %v153_v27, 272 }
  0x88   :  { %v66_v31 = vpop.permute.xlu1 %65  ;;  %v51_v32 = vpop.permute.xlu0 %50 }
  0x89   :  { %vm168_vm1 = vcmp.eq.s32.totalorder %v66_v31, %v3748_v30  ;;  %vm165_vm2 = vcmp.eq.s32.totalorder %v51_v32, %v3748_v30 }
  0x8a   :  { %v3338_v34 = vsel %vm168_vm1, 1.0, %v3649_v1  ;;  %v3335_v40 = vsel %vm165_vm2, 1.0, %v3649_v1 }
  0x8c   :  { %v70_v35 = vpop.permute.xlu1 %69  ;;  %v55_v36 = vpop.permute.xlu0 %54 }
  0x8d   :  { %vm169_vm3 = vcmp.eq.s32.totalorder %v70_v35, %v3748_v30  ;;  %vm166_vm4 = vcmp.eq.s32.totalorder %v55_v36, %v3748_v30 }
  0x8e   :  { %v3339_v38 = vsel %vm169_vm3, 1.0, %v3649_v1  ;;  %v3336_v39 = vsel %vm166_vm4, 1.0, %v3649_v1 }
  0x8f   :  { %v239_v41 = vpack.c.bf16 %v3339_v38, %v3338_v34  ;;  %v3360_v42 = vpack.c.bf16 %v3339_v38, %v3339_v38  ;;  %v237_v43 = vpack.c.bf16 %v3336_v39, %v3335_v40  ;;  %v3359_v44 = vpack.c.bf16 %v3336_v39, %v3336_v39 }
  0x90   :  { %v81_v45 = vpop.permute.xlu1 %80  ;;  %v59_v46 = vpop.permute.xlu0 %58 }
  0x91   :  { %v339_v47 = vrot.slane %v239_v41, %v3754_v37  ;;  %v346_v48 = vrot.slane %v3360_v42, %v3754_v37  ;;  %vm167_vm5 = vcmp.eq.s32.totalorder %v59_v46, %v3748_v30  ;;  %v276_v51 = vrot.slane %v237_v43, %v3754_v37 }
  0x92   :  { %v283_v52 = vrot.slane %v3359_v44, %v3754_v37  ;;  %vm171_vm6 = vcmp.eq.s32.totalorder %v81_v45, %v3748_v30  ;;  %v3337_v56 = vsel %vm167_vm5, 1.0, %v3649_v1 }
  0x93   :  { %v347_v49 = vcombine.high %v339_v47, %v339_v47  ;;  %v348_v50 = vcombine.high %v346_v48, %v346_v48  ;;  %v355_v55 = vrot.slane %v339_v47, %v3754_v37  ;;  %v362_v57 = vrot.slane %v346_v48, %v3754_v37 }
  0x94   :  { %v74_v53 = vpop.permute.xlu1 %73  ;;  %v85_v54 = vpop.permute.xlu0 %84  ;;  %v238_v58 = vpack.c.bf16 %v3337_v56, %v3337_v56  ;;  %v284_v61 = vcombine.high %v276_v51, %v276_v51  ;;  %v285_v62 = vcombine.high %v283_v52, %v283_v52  ;;  %v3341_v3 = vsel %vm171_vm6, 1.0, %v3649_v1 }
  0x95   :  { %v369_v59 = vrot.slane %v347_v49, %v3754_v37  ;;  %v376_v60 = vrot.slane %v348_v50, %v3754_v37  ;;  %v377_v2 = vcombine.high %v355_v55, %v355_v55  ;;  %vm170_vm7 = vcmp.eq.s32.totalorder %v74_v53, %v3748_v30 }
  0x96   :  { %v324_v4 = vrot.slane %v238_v58, %v3754_v37  ;;  %v3340_v5 = vsel %vm170_vm7, 1.0, %v3649_v1  ;;  %vm172_vm8 = vcmp.eq.s32.totalorder %v85_v54, %v3748_v30  ;;  %v378_v10 = vcombine.high %v362_v57, %v362_v57 }
  0x97   :  { %v240_v7 = vpack.c.bf16 %v3340_v5, %v3340_v5  ;;  %v3342_v8 = vsel %vm172_vm8, 1.0, %v3649_v1  ;;  %v306_v18 = vrot.slane %v284_v61, %v3754_v37  ;;  %v313_v19 = vrot.slane %v285_v62, %v3754_v37 }
  0x98   :  { %v100_v63 = vpop.permute.xlu1 %99  ;;  %v96_v0 = vpop.permute.xlu0 %95  ;;  %v331_v6 = vrot.slane %v324_v4, %v3754_v37  ;;  %v241_v11 = vpack.c.bf16 %v3342_v8, %v3341_v3  ;;  %v3361_v12 = vpack.c.bf16 %v3342_v8, %v3342_v8  ;;  %v379_v22 = vcombine.high %v369_v59, %v369_v59 }
  0x99   :  { %vm175_vm9 = vcmp.eq.s32.totalorder %v100_v63, %v3748_v30  ;;  %vm174_vm10 = vcmp.eq.s32.totalorder %v96_v0, %v3748_v30  ;;  %v387_v15 = vrot.slane %v240_v7, %v3754_v37  ;;  %v292_v23 = vrot.slane %v276_v51, %v3754_v37 }
  0x9a   :  { %v3345_v9 = vsel %vm175_vm9, 1.0, %v3649_v1  ;;  %v3344_v13 = vsel %vm174_vm10, 1.0, %v3649_v1  ;;  %v402_v20 = vrot.slane %v241_v11, %v3754_v37  ;;  %v409_v21 = vrot.slane %v3361_v12, %v3754_v37 }
  0x9b   :  { %v3362_v16 = vpack.c.bf16 %v3345_v9, %v3345_v9  ;;  %v243_v17 = vpack.c.bf16 %v3345_v9, %v3344_v13  ;;  %v299_v24 = vrot.slane %v283_v52, %v3754_v37  ;;  %v838_v25 = vcombine.low %v331_v6, %v355_v55 }
  0x9c   :  { %v89_v14 = vpop.permute.xlu0 %88  ;;  %v111_v26 = vpop.permute.xlu1 %110  ;;  %v839_v27 = vcombine.low %v369_v59, %v377_v2  ;;  %v380_v28 = vcombine.high %v376_v60, %v376_v60  ;;  %v394_v29 = vrot.slane %v387_v15, %v3754_v37  ;;  %v410_v32 = vcombine.high %v402_v20, %v402_v20 }
  0x9d   :  { %vm173_vm11 = vcmp.eq.s32.totalorder %v89_v14, %v3748_v30  ;;  %v411_v33 = vcombine.high %v409_v21, %v409_v21  ;;  %v472_v34 = vrot.slane %v3362_v16, %v3754_v37  ;;  %v465_v35 = vrot.slane %v243_v17, %v3754_v37 }
  0x9e   :  { %v3343_v31 = vsel %vm173_vm11, 1.0, %v3649_v1  ;;  %v841_v36 = vcombine.low %v376_v60, %v378_v10  ;;  %v789_v38 = vcombine.low %v292_v23, %v306_v18  ;;  %v3367_v39 = vcombine.high %v292_v23, %v306_v18 }
  0x9f   :  { %v791_v40 = vcombine.low %v299_v24, %v313_v19  ;;  %v840_v41 = vcombine.low %v379_v22, %v362_v57  ;;  %v3368_v42 = vcombine.high %v299_v24, %v313_v19  ;;  %v848_v43 = vrot.slane %v838_v25, %v3754_v37 }
  0xa0   :  { %v242_v44 = vpack.c.bf16 %v3343_v31, %v3343_v31  ;;  %v3796_v45 = vcombine.low %v380_v28, %v394_v29  ;;  %v3799_v46 = vrot.slane %v402_v20, %v3754_v37  ;;  %v3802_v47 = vrot.slane %v409_v21, %v3754_v37  ;;  %v115_v49 = vpop.permute.xlu0 %114  ;;  %v104_v54 = vpop.permute.xlu1 %103 }
  0xa1   :  { %v474_v48 = vcombine.high %v472_v34, %v472_v34  ;;  %v3805_v50 = vrot.slane %v410_v32, %v3754_v37  ;;  %v3808_v51 = vrot.slane %v411_v33, %v3754_v37  ;;  %v3811_v52 = vrot.slane %v472_v34, %v3754_v37 }
  0xa2   :  { %v473_v53 = vcombine.high %v465_v35, %v465_v35  ;;  %vm177_vm12 = vcmp.eq.s32.totalorder %v111_v26, %v3748_v30  ;;  %v799_v55 = vrot.slane %v789_v38, %v3754_v37  ;;  %v806_v56 = vrot.slane %v3367_v39, %v3754_v37 }
  0xa3   :  { %v813_v57 = vrot.slane %v791_v40, %v3754_v37  ;;  %v3818_v58 = vrot.slane %v465_v35, %v3754_v37  ;;  %v450_v59 = vrot.slane %v242_v44, %v3754_v37  ;;  %v3347_v60 = vsel %vm177_vm12, 1.0, %v3649_v1 }
  0xa4   :  { %v820_v61 = vrot.slane %v3368_v42, %v3754_v37  ;;  %v897_v62 = vrot.slane %v3796_v45, %v3754_v37  ;;  %v821_v63 = vcombine.low %v799_v55, %v806_v56  ;;  %vm178_vm13 = vcmp.eq.s32.totalorder %v115_v49, %v3748_v30  ;;  %v126_v0 = vpop.permute.xlu0 %125  ;;  %v130_v10 = vpop.permute.xlu1 %129 }
  0xa5   :  { %vm176_vm14 = vcmp.eq.s32.totalorder %v104_v54, %v3748_v30  ;;  %v3828_v2 = vrot.slane %v474_v48, %v3754_v37  ;;  %v3348_v4 = vsel %vm178_vm13, 1.0, %v3649_v1  ;;  %v504_v6 = vcombine.high %v3811_v52, %v3811_v52 }
  0xa6   :  { %v822_v3 = vcombine.low %v813_v57, %v820_v61  ;;  %v3346_v5 = vsel %vm176_vm14, 1.0, %v3649_v1  ;;  %v829_v7 = vrot.slane %v821_v63, %v3754_v37  ;;  %v245_v8 = vpack.c.bf16 %v3348_v4, %v3347_v60 }
  0xa7   :  { %v3363_v9 = vpack.c.bf16 %v3348_v4, %v3348_v4  ;;  %vm180_vm15 = vcmp.eq.s32.totalorder %v126_v0, %v3748_v30  ;;  %v855_v12 = vrot.slane %v839_v27, %v3754_v37  ;;  %v862_v13 = vrot.slane %v840_v41, %v3754_v37 }
  0xa8   :  { %v836_v11 = vrot.slane %v822_v3, %v3754_v37  ;;  %v3840_v14 = vrot.slane %v473_v53, %v3754_v37  ;;  %v528_v15 = vrot.slane %v245_v8, %v3754_v37  ;;  %v244_v16 = vpack.c.bf16 %v3346_v5, %v3346_v5  ;;  %v119_v25 = vpop.permute.xlu0 %118  ;;  %v141_v39 = vpop.permute.xlu1 %140 }
  0xa9   :  { %v3350_v17 = vsel %vm180_vm15, 1.0, %v3649_v1  ;;  %v869_v19 = vrot.slane %v841_v36, %v3754_v37  ;;  %v870_v20 = vcombine.low %v848_v43, %v855_v12  ;;  %vm181_vm1 = vcmp.eq.s32.totalorder %v130_v10, %v3748_v30 }
  0xaa   :  { %v837_v18 = vcombine.low %v829_v7, %v836_v11  ;;  %v888_v21 = vcombine.low %v3799_v46, %v3805_v50  ;;  %v3369_v22 = vcombine.high %v3799_v46, %v3805_v50  ;;  %v890_v23 = vcombine.low %v3802_v47, %v3808_v51 }
  0xab   :  { %v457_v24 = vrot.slane %v450_v59, %v3754_v37  ;;  %v3370_v26 = vcombine.high %v3802_v47, %v3808_v51  ;;  %v535_v27 = vrot.slane %v3363_v9, %v3754_v37  ;;  %v871_v28 = vcombine.low %v862_v13, %v869_v19 }
  0xac   :  { %3489 = vmatmul.mubr.bf16.vlgmr.msra.gmra.mxu0 %v837_v18  ;;  %v3351_v29 = vsel %vm181_vm1, 1.0, %v3649_v1  ;;  %v3858_v31 = vcombine.low %v3828_v2, %v504_v6  ;;  %v513_v32 = vrot.slane %v244_v16, %v3754_v37  ;;  %v536_v35 = vcombine.high %v528_v15, %v528_v15  ;;  %v145_v49 = vpop.permute.xlu0 %144  ;;  %v134_v7 = vpop.permute.xlu1 %133 }
  0xad   :  { %3492 = vmatprep.mubr.msk.bf16.mxu0 %vm3650_vm0, %v3649_v1  ;;  %v247_v33 = vpack.c.bf16 %v3351_v29, %v3350_v17  ;;  %v3364_v34 = vpack.c.bf16 %v3351_v29, %v3351_v29  ;;  %v878_v36 = vrot.slane %v870_v20, %v3754_v37  ;;  %v885_v38 = vrot.slane %v871_v28, %v3754_v37 }
  0xae   :  { %vm179_vm2 = vcmp.eq.s32.totalorder %v119_v25, %v3748_v30  ;;  %v503_v40 = vcombine.high %v3818_v58, %v3818_v58  ;;  %v505_v41 = vcombine.high %v3840_v14, %v3840_v14  ;;  %v3871_v42 = vcombine.low %v457_v24, %v3818_v58 }
  0xaf   :  { %vm183_vm3 = vcmp.eq.s32.totalorder %v141_v39, %v3748_v30  ;;  %v537_v43 = vcombine.high %v535_v27, %v535_v27  ;;  %v506_v44 = vcombine.high %v3828_v2, %v3828_v2  ;;  %v591_v46 = vrot.slane %v247_v33, %v3754_v37 }
  0xb0   :  { %v598_v48 = vrot.slane %v3364_v34, %v3754_v37  ;;  %v3879_v50 = vrot.slane %v528_v15, %v3754_v37  ;;  %v3349_v53 = vsel %vm179_vm2, 1.0, %v3649_v1  ;;  %v904_v54 = vrot.slane %v888_v21, %v3754_v37  ;;  %v149_v17 = vpop.permute.xlu0 %148  ;;  %v156_v28 = vpop.permute.xlu1 %155 }
  0xb1   :  { %v911_v55 = vrot.slane %v3369_v22, %v3754_v37  ;;  %v3885_v56 = vrot.slane %v536_v35, %v3754_v37  ;;  %v520_v57 = vrot.slane %v513_v32, %v3754_v37  ;;  %v886_v58 = vcombine.low %v878_v36, %v885_v38 }
  0xb2   :  { %v3353_v59 = vsel %vm183_vm3, 1.0, %v3649_v1  ;;  %v246_v60 = vpack.c.bf16 %v3349_v53, %v3349_v53  ;;  %v918_v61 = vrot.slane %v890_v23, %v3754_v37  ;;  %v919_v63 = vcombine.low %v897_v62, %v904_v54 }
  0xb3   :  { %vm184_vm4 = vcmp.eq.s32.totalorder %v145_v49, %v3748_v30  ;;  %v3895_v0 = vrot.slane %v535_v27, %v3754_v37  ;;  %v3898_v2 = vrot.slane %v537_v43, %v3754_v37  ;;  %v599_v3 = vcombine.high %v591_v46, %v591_v46 }
  0xb4   :  { %3493 = vmatmul.mubr.bf16.gmra.mxu0 %v886_v58  ;;  %v600_v4 = vcombine.high %v598_v48, %v598_v48  ;;  %v607_v5 = vrot.slane %v591_v46, %v3754_v37  ;;  %v576_v6 = vrot.slane %v246_v60, %v3754_v37  ;;  %v920_v45 = vcombine.low %v911_v55, %v918_v61  ;;  %v164_v55 = vpop.permute.xlu1 %163 }
  0xb5   :  { %3496 = vmatprep.mubr.msk.bf16.mxu0 %vm3650_vm0, %v3649_v1  ;;  %v3354_v62 = vsel %vm184_vm4, 1.0, %v3649_v1  ;;  %v938_v8 = vcombine.low %v3840_v14, %v503_v40  ;;  %v953_v9 = vrot.slane %v3871_v42, %v3754_v37  ;;  %v927_v10 = vrot.slane %v919_v63, %v3754_v37 }
  0xb6   :  { %v249_v11 = vpack.c.bf16 %v3354_v62, %v3353_v59  ;;  %v987_v12 = vcombine.low %v3879_v50, %v3885_v56  ;;  %v986_v13 = vcombine.low %v506_v44, %v520_v57  ;;  %v583_v15 = vrot.slane %v576_v6, %v3754_v37  ;;  %v160_v44 = vpop.permute.xlu0 %159 }
  0xb7   :  { %v934_v16 = vrot.slane %v920_v45, %v3754_v37  ;;  %v3371_v18 = vcombine.high %v3879_v50, %v3885_v56  ;;  %v1034_v14 = vcombine.low %v3895_v0, %v3898_v2  ;;  %v3918_v19 = vrot.slane %v598_v48, %v3754_v37 }
  0xb8   :  { %vm182_vm5 = vcmp.eq.s32.totalorder %v134_v7, %v3748_v30  ;;  %v3922_v20 = vrot.slane %v599_v3, %v3754_v37  ;;  %v3925_v21 = vrot.slane %v600_v4, %v3754_v37  ;;  %v629_v22 = vcombine.high %v607_v5, %v607_v5 }
  0xb9   :  { %v3352_v23 = vsel %vm182_vm5, 1.0, %v3649_v1  ;;  %v935_v24 = vcombine.low %v927_v10, %v934_v16  ;;  %v3365_v25 = vpack.c.bf16 %v3354_v62, %v3354_v62  ;;  %v654_v27 = vrot.slane %v249_v11, %v3754_v37 }
  0xba   :  { %vm185_vm6 = vcmp.eq.s32.totalorder %v149_v17, %v3748_v30  ;;  %v3372_v29 = vcombine.high %v3895_v0, %v3898_v2  ;;  %v1002_v32 = vrot.slane %v986_v13, %v3754_v37  ;;  %v3933_v33 = vcombine.low %v583_v15, %v607_v5 }
  0xbb   :  { %v248_v34 = vpack.c.bf16 %v3352_v23, %v3352_v23  ;;  %v630_v35 = vcombine.high %v3918_v19, %v3918_v19  ;;  %v631_v36 = vcombine.high %v3922_v20, %v3922_v20  ;;  %v939_v38 = vcombine.low %v505_v41, %v3811_v52 }
  0xbc   :  { %3497 = vmatmul.mubr.bf16.gmra.mxu0 %v935_v24  ;;  %v946_v39 = vrot.slane %v3370_v26, %v3754_v37  ;;  %v3945_v40 = vcombine.low %v3922_v20, %v629_v22  ;;  %v3355_v42 = vsel %vm185_vm6, 1.0, %v3649_v1  ;;  %v960_v43 = vrot.slane %v938_v8, %v3754_v37 }
  0xbd   :  { %3500 = vmatprep.mubr.msk.bf16.mxu0 %vm3650_vm0, %v3649_v1  ;;  %vm186_vm7 = vcmp.eq.s32.totalorder %v156_v28, %v3748_v30  ;;  %v3953_v52 = vrot.slane %v3365_v25, %v3754_v37  ;;  %v662_v41 = vcombine.high %v654_v27, %v654_v27  ;;  %v632_v47 = vcombine.high %v3925_v21, %v3925_v21 }
  0xbe   :  { %v967_v51 = vrot.slane %v939_v38, %v3754_v37  ;;  %v1058_v26 = vrot.slane %v3933_v33, %v3754_v37  ;;  %v3961_v46 = vrot.slane %v654_v27, %v3754_v37  ;;  %v639_v48 = vrot.slane %v248_v34, %v3754_v37 }
  0xbf   :  { %v968_v49 = vcombine.low %v946_v39, %v953_v9  ;;  %v250_v50 = vpack.c.bf16 %v3355_v42, %v3355_v42  ;;  %v3356_v54 = vsel %vm186_vm7, 1.0, %v3649_v1  ;;  %vm187_vm8 = vcmp.eq.s32.totalorder %v160_v44, %v3748_v30 }
  0xc0   :  { %v969_v53 = vcombine.low %v960_v43, %v967_v51  ;;  %v3357_v57 = vsel %vm187_vm8, 1.0, %v3649_v1  ;;  %v995_v58 = vrot.slane %v3858_v31, %v3754_v37  ;;  %v1009_v59 = vrot.slane %v987_v12, %v3754_v37 }
  0xc1   :  { %v976_v56 = vrot.slane %v968_v49, %v3754_v37  ;;  %v3972_v60 = vrot.slane %v662_v41, %v3754_v37  ;;  %v251_v63 = vpack.c.bf16 %v3357_v57, %v3356_v54  ;;  %v3366_v0 = vpack.c.bf16 %v3357_v57, %v3357_v57 }
  0xc2   :  { %v983_v61 = vrot.slane %v969_v53, %v3754_v37  ;;  %v646_v2 = vrot.slane %v639_v48, %v3754_v37  ;;  %v1016_v3 = vrot.slane %v3371_v18, %v3754_v37  ;;  %v1017_v4 = vcombine.low %v995_v58, %v1002_v32 }
  0xc3   :  { %vm188_vm9 = vcmp.eq.s32.totalorder %v164_v55, %v3748_v30  ;;  %v717_v6 = vrot.slane %v251_v63, %v3754_v37  ;;  %v724_v31 = vrot.slane %v3366_v0, %v3754_v37  ;;  %v1044_v9 = vrot.slane %v1034_v14, %v3754_v37 }
  0xc4   :  { %v984_v5 = vcombine.low %v976_v56, %v983_v61  ;;  %v3358_v45 = vsel %vm188_vm9, 1.0, %v3649_v1  ;;  %v1018_v62 = vcombine.low %v1009_v59, %v1016_v3  ;;  %v1025_v7 = vrot.slane %v1017_v4, %v3754_v37 }
  0xc5   :  { %v252_v8 = vpack.c.bf16 %v3358_v45, %v3358_v45  ;;  %v725_v10 = vcombine.high %v717_v6, %v717_v6  ;;  %v726_v11 = vcombine.high %v724_v31, %v724_v31  ;;  %v733_v12 = vrot.slane %v717_v6, %v3754_v37 }
  0xc6   :  { %3501 = vmatmul.mubr.bf16.gmra.mxu0 %v984_v5  ;;  %v740_v30 = vrot.slane %v724_v31, %v3754_v37  ;;  %v1032_v13 = vrot.slane %v1018_v62, %v3754_v37  ;;  %v1051_v16 = vrot.slane %v3372_v29, %v3754_v37  ;;  %v1065_v17 = vrot.slane %v3945_v40, %v3754_v37 }
  0xc7   :  { %3504 = vmatprep.mubr.msk.bf16.mxu0 %vm3650_vm0, %v3649_v1  ;;  %v765_v15 = vrot.slane %v252_v8, %v3754_v37  ;;  %v747_v18 = vrot.slane %v725_v10, %v3754_v37  ;;  %v754_v14 = vrot.slane %v726_v11, %v3754_v37  ;;  %v755_v20 = vcombine.high %v733_v12, %v733_v12 }
  0xc8   :  { %v756_v22 = vcombine.high %v740_v30, %v740_v30  ;;  %v1083_v23 = vcombine.low %v631_v36, %v3918_v19  ;;  %v1084_v24 = vcombine.low %v3925_v21, %v630_v35  ;;  %v663_v25 = vcombine.high %v3953_v52, %v3953_v52 }
  0xc9   :  { %v772_v27 = vrot.slane %v765_v15, %v3754_v37  ;;  %v702_v28 = vrot.slane %v250_v50, %v3754_v37  ;;  %v757_v29 = vcombine.high %v747_v18, %v747_v18  ;;  %v1181_v32 = vcombine.low %v747_v18, %v755_v20 }
  0xca   :  { %v758_v33 = vcombine.high %v754_v14, %v754_v14  ;;  %v1086_v34 = vcombine.low %v3961_v46, %v3972_v60  ;;  %v1085_v38 = vcombine.low %v632_v47, %v646_v2  ;;  %v1183_v39 = vcombine.low %v754_v14, %v756_v22 }
  0xcb   :  { %v1066_v40 = vcombine.low %v1044_v9, %v1051_v16  ;;  %v1182_v42 = vcombine.low %v757_v29, %v740_v30  ;;  %v1033_v19 = vcombine.low %v1025_v7, %v1032_v13  ;;  %v1067_v21 = vcombine.low %v1058_v26, %v1065_v17  ;;  %v3588_v30 = vld [vmem:[#allocation2 + $0x28] sm:$0xff]   ;;  %v3589_v13 = vld [vmem:[#allocation2 + $0x20] sm:$0xff]  }
  0xcc   :  { %v1184_v36 = vcombine.low %v758_v33, %v772_v27  ;;  %v677_v35 = vrot.slane %v3953_v52, %v3754_v37  ;;  %v691_v43 = vrot.slane %v663_v25, %v3754_v37  ;;  %v709_v44 = vrot.slane %v702_v28, %v3754_v37  ;;  %3524 = vmatprep.subr.bf16.mxu1 %v3588_v30 }
  0xcd   :  { %v1191_v51 = vrot.slane %v1181_v32, %v3754_v37  ;;  %v1107_v47 = vrot.slane %v1085_v38, %v3754_v37  ;;  %v1074_v48 = vrot.slane %v1066_v40, %v3754_v37  ;;  %v1198_v26 = vrot.slane %v1182_v42, %v3754_v37  ;;  %3525 = vmatpush3.bf16.msra.mxu1 %v3588_v30 }
  0xce   :  { %3505 = vmatmul.mubr.bf16.gmra.mxu0 %v1033_v19  ;;  %v1212_v41 = vrot.slane %v1184_v36, %v3754_v37  ;;  %v1205_v52 = vrot.slane %v1183_v39, %v3754_v37  ;;  %v1081_v49 = vrot.slane %v1067_v21, %v3754_v37  ;;  %v1093_v50 = vrot.slane %v1083_v23, %v3754_v37 }
  0xcf   :  { %3508 = vmatprep.mubr.msk.bf16.mxu0 %vm3650_vm0, %v3649_v1  ;;  %v1100_v53 = vrot.slane %v1084_v24, %v3754_v37  ;;  %v1114_v54 = vrot.slane %v1086_v34, %v3754_v37  ;;  %v1213_v55 = vcombine.low %v1191_v51, %v1198_v26  ;;  %v3373_v57 = vcombine.high %v3961_v46, %v3972_v60 }
  0xd0   :  { %v1214_v56 = vcombine.low %v1205_v52, %v1212_v41  ;;  %v1133_v58 = vcombine.low %v677_v35, %v691_v43  ;;  %v3374_v59 = vcombine.high %v677_v35, %v691_v43  ;;  %v1135_v0 = vcombine.low %v709_v44, %v733_v12  ;;  %3526 = vmatprep.subr.bf16.mxu1 %v3589_v13 }
  0xd1   :  { %v1221_v61 = vrot.slane %v1213_v55, %v3754_v37  ;;  %v1082_v2 = vcombine.low %v1074_v48, %v1081_v49  ;;  %v1115_v3 = vcombine.low %v1093_v50, %v1100_v53  ;;  %v1116_v4 = vcombine.low %v1107_v47, %v1114_v54  ;;  %3527 = vmatpush3.bf16.msra.mxu1 %v3589_v13 }
  0xd2   :  { %v1228_v63 = vrot.slane %v1214_v56, %v3754_v37  ;;  %v1142_v6 = vrot.slane %v3373_v57, %v3754_v37  ;;  %v1149_v31 = vrot.slane %v1133_v58, %v3754_v37  ;;  %v1156_v45 = vrot.slane %v3374_v59, %v3754_v37 }
  0xd3   :  { %v1123_v46 = vrot.slane %v1115_v3, %v3754_v37  ;;  %v1130_v60 = vrot.slane %v1116_v4, %v3754_v37  ;;  %v1163_v62 = vrot.slane %v1135_v0, %v3754_v37  ;;  %v3590_v3 = vld [vmem:[#allocation2 + $0x18] sm:$0xff]   ;;  %vm2355_vm10 = vsmask.f32 7424 }
  0xd4   :  { %v1229_v5 = vcombine.low %v1221_v61, %v1228_v63  ;;  %v1164_v8 = vcombine.low %v1142_v6, %v1149_v31  ;;  %3528 = vmatprep.subr.bf16.mxu1 %v3590_v3  ;;  %vm2876_vm11 = vcmask 261120   ;;  %vm2893_vm12 = vcmask 523264  }
  0xd5   :  { %v1131_v7 = vcombine.low %v1123_v46, %v1130_v60  ;;  %v1165_v9 = vcombine.low %v1156_v45, %v1163_v62  ;;  %3529 = vmatpush3.bf16.msra.mxu1 %v3590_v3  ;;  %vm2958_vm13 = vcmask 785408   ;;  %vm3212_vm14 = vcmask 1042434  }
  0xd6   :  { %3509 = vmatmul.mubr.bf16.gmra.mxu0 %v1082_v2  ;;  %v1172_v10 = vrot.slane %v1164_v8, %v3754_v37  ;;  %vm3215_vm15 = vcmask 1043459   ;;  %vm3218_vm1 = vcmask 1044484   ;;  %vm3221_vm2 = vcmask 1045509  }
  0xd7   :  { %3512 = vmatprep.mubr.msk.bf16.mxu0 %vm3650_vm0, %v3649_v1  ;;  %v1179_v11 = vrot.slane %v1165_v9, %v3754_v37  ;;  %vm3224_vm3 = vcmask 1046534   ;;  %vm3227_vm4 = vcmask 1047559  }
  0xd9   :  { %v1180_v12 = vcombine.low %v1172_v10, %v1179_v11 }
  0xde   :  { %3513 = vmatmul.mubr.bf16.gmra.mxu0 %v1131_v7 }
  0xdf   :  { %3516 = vmatprep.mubr.msk.bf16.mxu0 %vm3650_vm0, %v3649_v1 }
  0xe6   :  { %3517 = vmatmul.mubr.bf16.gmra.mxu0 %v1180_v12 }
  0xe7   :  { %3520 = vmatprep.mubr.msk.bf16.mxu0 %vm3650_vm0, %v3649_v1 }
  0xee   :  { %3521 = vmatmul.mubr.bf16.gmra.mxu0 %v1229_v5 }
 0x16c   :  { %v1321_v15 = vpop.f32.mrf.mxu0 }
 0x16e   :  { %v3490_v16 = vpop.f32.mrf.mxu0 }
 0x170   :  { %v1324_v17 = vpop.f32.mrf.mxu0 }
 0x171   :  { %v1392_v18 = vpack.c.bf16 %v1324_v17, %v1321_v15  ;;  %v3383_v14 = vpack.c.bf16 %v1324_v17, %v1324_v17 }
 0x172   :  { %v3491_v20 = vpop.f32.mrf.mxu0 }
 0x173   :  { %v1417_v22 = vrot.slane %v1392_v18, %v3754_v37  ;;  %v1424_v23 = vrot.slane %v3383_v14, %v3754_v37 }
 0x174   :  { %v1329_v24 = vpop.f32.mrf.mxu0 }
 0x175   :  { %v1425_v25 = vcombine.high %v1417_v22, %v1417_v22  ;;  %v1426_v27 = vcombine.high %v1424_v23, %v1424_v23  ;;  %v1433_v28 = vrot.slane %v1417_v22, %v3754_v37  ;;  %v1440_v29 = vrot.slane %v1424_v23, %v3754_v37 }
 0x176   :  { %v3494_v32 = vpop.f32.mrf.mxu0 }
 0x177   :  { %v1447_v33 = vrot.slane %v1425_v25, %v3754_v37  ;;  %v4042_v34 = vrot.slane %v1426_v27, %v3754_v37  ;;  %v1455_v38 = vcombine.high %v1433_v28, %v1433_v28  ;;  %v1456_v40 = vcombine.high %v1440_v29, %v1440_v29  ;;  %v3591_v27 = vld [vmem:[#allocation2 + $0x10] sm:$0xff]  }
 0x178   :  { %v1332_v39 = vpop.f32.mrf.mxu0  ;;  %3530 = vmatprep.subr.bf16.mxu1 %v3591_v27 }
 0x179   :  { %v1851_v42 = vcombine.low %v1433_v28, %v1447_v33  ;;  %v3392_v19 = vcombine.high %v1433_v28, %v1447_v33  ;;  %v1853_v36 = vcombine.low %v1440_v29, %v4042_v34  ;;  %v3393_v21 = vcombine.high %v1440_v29, %v4042_v34  ;;  %v3592_v28 = vld [vmem:[#allocation2 + $0x8] sm:$0xff]   ;;  %3531 = vmatpush3.bf16.msra.mxu1 %v3591_v27 }
 0x17a   :  { %v1393_v35 = vpack.c.bf16 %v1332_v39, %v1329_v24  ;;  %v3384_v43 = vpack.c.bf16 %v1332_v39, %v1332_v39  ;;  %v3495_v44 = vpop.f32.mrf.mxu0  ;;  %v1457_v41 = vcombine.high %v1447_v33, %v1447_v33  ;;  %v4052_v53 = vcombine.low %v1447_v33, %v1455_v38  ;;  %3532 = vmatprep.subr.bf16.mxu1 %v3592_v28 }
 0x17b   :  { %v1861_v51 = vrot.slane %v1851_v42, %v3754_v37  ;;  %v1868_v47 = vrot.slane %v3392_v19, %v3754_v37  ;;  %v1875_v48 = vrot.slane %v1853_v36, %v3754_v37  ;;  %v1882_v26 = vrot.slane %v3393_v21, %v3754_v37 }
 0x17c   :  { %v1466_v52 = vrot.slane %v1393_v35, %v3754_v37  ;;  %v1473_v49 = vrot.slane %v3384_v43, %v3754_v37  ;;  %v1337_v50 = vpop.f32.mrf.mxu0  ;;  %v4054_v54 = vcombine.low %v1457_v41, %v1440_v29  ;;  %v1458_v57 = vcombine.high %v4042_v34, %v4042_v34 }
 0x17d   :  { %v1883_v55 = vcombine.low %v1861_v51, %v1868_v47  ;;  %v1884_v56 = vcombine.low %v1875_v48, %v1882_v26  ;;  %v4059_v58 = vcombine.low %v4042_v34, %v1456_v40  ;;  %v2478_v6 = vrot.slane %v4052_v53, %v3754_v37  ;;  %3533 = vmatpush3.bf16.msra.mxu1 %v3592_v28 }
 0x17e   :  { %v1474_v59 = vcombine.high %v1466_v52, %v1466_v52  ;;  %v1475_v61 = vcombine.high %v1473_v49, %v1473_v49  ;;  %v4062_v63 = vrot.slane %v1466_v52, %v3754_v37  ;;  %v4065_v0 = vrot.slane %v1473_v49, %v3754_v37  ;;  %v3498_v2 = vpop.f32.mrf.mxu0 }
 0x17f   :  { %v1891_v4 = vrot.slane %v1883_v55, %v3754_v37  ;;  %v1898_v5 = vrot.slane %v1884_v56, %v3754_v37  ;;  %v2485_v31 = vrot.slane %v4054_v54, %v3754_v37  ;;  %v2492_v43 = vrot.slane %v4059_v58, %v3754_v37 }
 0x180   :  { %v4074_v46 = vrot.slane %v1474_v59, %v3754_v37  ;;  %v4077_v60 = vrot.slane %v1475_v61, %v3754_v37  ;;  %v1504_v45 = vcombine.high %v4062_v63, %v4062_v63  ;;  %v1505_v62 = vcombine.high %v4065_v0, %v4065_v0  ;;  %v1340_v7 = vpop.f32.mrf.mxu0 }
 0x181   :  { %v1394_v8 = vpack.c.bf16 %v1340_v7, %v1337_v50  ;;  %v3385_v9 = vpack.c.bf16 %v1340_v7, %v1340_v7  ;;  %v4083_v10 = vcombine.low %v1891_v4, %v1898_v5  ;;  %v2249_v11 = vrot.slane %v4062_v63, %v3754_v37 }
 0x182   :  { %v1506_v12 = vcombine.high %v4074_v46, %v4074_v46  ;;  %v1900_v30 = vcombine.low %v4074_v46, %v1504_v45  ;;  %v1902_v13 = vcombine.low %v4077_v60, %v1505_v62  ;;  %v1507_v15 = vcombine.high %v4077_v60, %v4077_v60  ;;  %v3499_v16 = vpop.f32.mrf.mxu0 }
 0x183   :  { %v1515_v17 = vrot.slane %v1394_v8, %v3754_v37  ;;  %v1522_v18 = vrot.slane %v3385_v9, %v3754_v37  ;;  %v2256_v14 = vrot.slane %v2249_v11, %v3754_v37  ;;  %v2357_v20 = vshrl.u32 %v4083_v10, 16 }
 0x184   :  { %v1901_v22 = vcombine.low %v1506_v12, %v4065_v0  ;;  %v1910_v23 = vrot.slane %v1900_v30, %v3754_v37  ;;  %v1924_v24 = vrot.slane %v1902_v13, %v3754_v37  ;;  %v2359_v25 = vshll.u32 %v4083_v10, 16 }
 0x185   :  { %v1523_v29 = vcombine.high %v1515_v17, %v1515_v17  ;;  %v1524_v32 = vcombine.high %v1522_v18, %v1522_v18  ;;  %v4102_v33 = vrot.slane %v1515_v17, %v3754_v37  ;;  %v4105_v34 = vrot.slane %v1522_v18, %v3754_v37 }
 0x186   :  { %v1917_v38 = vrot.slane %v1901_v22, %v3754_v37  ;;  %v1345_v39 = vpop.f32.mrf.mxu0  ;;  %v2361_v40 = vrot.slane %v2359_v25, 1  ;;  %v2364_v42 = vshll.u32 %v2256_v14, 16  ;;  %v2471_v19 = vcombine.low %v1458_v57, %v4062_v63 }
 0x187   :  { %v4110_v36 = vrot.slane %v1523_v29, %v3754_v37  ;;  %v4113_v21 = vrot.slane %v1524_v32, %v3754_v37  ;;  %v1903_v35 = vcombine.low %v1507_v15, %v4102_v33  ;;  %v2500_v55 = vcombine.low %v2478_v6, %v2485_v31  ;;  %v3593_v31 = vld [vmem:[#allocation2] sm:$0xff]  }
 0x188   :  { %v1932_v44 = vcombine.low %v1910_v23, %v1917_v38  ;;  %v3502_v41 = vpop.f32.mrf.mxu0  ;;  %v2362_v51 = vor.u32 %v2361_v40, %v2357_v20  ;;  %v2366_v47 = vrot.slane %v2364_v42, 1  ;;  %v2499_v48 = vrot.slane %v2471_v19, %v3754_v37  ;;  %3534 = vmatprep.subr.bf16.mxu1 %v3593_v31 }
 0x189   :  { %v1931_v26 = vrot.slane %v1903_v35, %v3754_v37  ;;  %v3394_v52 = vcombine.high %v4102_v33, %v4110_v36  ;;  %v1950_v49 = vcombine.low %v4105_v34, %v4113_v21  ;;  %v3395_v50 = vcombine.high %v4105_v34, %v4113_v21  ;;  %3535 = vmatpush3.bf16.msra.mxu1 %v3593_v31 }
 0x18a   :  { %v1348_v53 = vpop.f32.mrf.mxu0  ;;  %v2367_v54 = vsel %vm2355_vm10, %v2362_v51, %v2366_v47  ;;  %v2501_v56 = vcombine.low %v2492_v43, %v2499_v48  ;;  %v1940_v61 = vrot.slane %v1932_v44, %v3754_v37  ;;  %v2508_v5 = vrot.slane %v2500_v55, %v3754_v37  ;;  %3552 = vmatprep.subr.bf16.mxu1 %v3649_v1 }
 0x18b   :  { %v1933_v57 = vcombine.low %v1924_v24, %v1931_v26  ;;  %v4128_v58 = vrot.slane %v3394_v52, %v3754_v37  ;;  %v4131_v59 = vrot.slane %v1950_v49, %v3754_v37  ;;  %2452 = vrot.lane.b32.xlu0 %v2367_v54, %s3652_s1  ;;  %v1395_v2 = vpack.c.bf16 %v1348_v53, %v1345_v39 }
 0x18c   :  { %v3386_v3 = vpack.c.bf16 %v1348_v53, %v1348_v53  ;;  %v3503_v4 = vpop.f32.mrf.mxu0  ;;  %v2515_v6 = vrot.slane %v2501_v56, %v3754_v37  ;;  %v4138_v45 = vrot.slane %v3395_v50, %v3754_v37  ;;  %v2263_v8 = vrot.slane %v4110_v36, %v3754_v37 }
 0x18d   :  { %v1981_v62 = vcombine.low %v4128_v58, %v4131_v59  ;;  %v1947_v7 = vrot.slane %v1933_v57, %v3754_v37  ;;  %v1564_v9 = vrot.slane %v1395_v2, %v3754_v37  ;;  %v3400_v13 = vcombine.high %v4062_v63, %v4074_v46 }
 0x18e   :  { %v1571_v11 = vrot.slane %v3386_v3, %v3754_v37  ;;  %v1353_v12 = vpop.f32.mrf.mxu0  ;;  %v2516_v30 = vcombine.low %v2508_v5, %v2515_v6  ;;  %v2270_v16 = vrot.slane %v2263_v8, %v3754_v37  ;;  %v2518_v17 = vcombine.low %v4065_v0, %v4077_v60 }
 0x18f   :  { %v4149_v15 = vcombine.low %v1940_v61, %v1947_v7  ;;  %v3401_v18 = vcombine.high %v4065_v0, %v4077_v60  ;;  %v1572_v14 = vcombine.high %v1564_v9, %v1564_v9  ;;  %v4157_v22 = vrot.slane %v1564_v9, %v3754_v37 }
 0x190   :  { %v1573_v20 = vcombine.high %v1571_v11, %v1571_v11  ;;  %v4160_v23 = vrot.slane %v1571_v11, %v3754_v37  ;;  %2860 = vrot.lane.b32.xlu0 %v2516_v30, %s3647_s27  ;;  %v3506_v63 = vpop.f32.mrf.mxu0  ;;  %v2376_v25 = vshll.u32 %v2270_v16, 16  ;;  %v2520_v27 = vcombine.low %v4102_v33, %v4110_v36 }
 0x191   :  { %v2369_v46 = vshrl.u32 %v4149_v15, 16  ;;  %v2371_v24 = vshll.u32 %v4149_v15, 16  ;;  %v4168_v0 = vrot.slane %v1572_v14, %v3754_v37  ;;  %v2527_v32 = vrot.slane %v3400_v13, %v3754_v37 }
 0x192   :  { %v4171_v60 = vrot.slane %v1573_v20, %v3754_v37  ;;  %v1603_v28 = vcombine.high %v4160_v23, %v4160_v23  ;;  %v1356_v29 = vpop.f32.mrf.mxu0  ;;  %v4179_v38 = vcombine.high %v4157_v22, %v4157_v22  ;;  %v2378_v44 = vrot.slane %v2376_v25, 1 }
 0x193   :  { %v1396_v33 = vpack.c.bf16 %v1356_v29, %v1353_v12  ;;  %v3387_v39 = vpack.c.bf16 %v1356_v29, %v1356_v29  ;;  %v2373_v40 = vrot.slane %v2371_v24, 1  ;;  %v1604_v42 = vcombine.high %v4168_v0, %v4168_v0 }
 0x194   :  { %v1952_v19 = vcombine.low %v4157_v22, %v4168_v0  ;;  %v4186_v35 = vcombine.low %v4171_v60, %v1603_v28  ;;  %v3507_v43 = vpop.f32.mrf.mxu0  ;;  %v1605_v41 = vcombine.high %v4171_v60, %v4171_v60  ;;  %v2534_v53 = vrot.slane %v2518_v17, %v3754_v37 }
 0x195   :  { %v1613_v51 = vrot.slane %v1396_v33, %v3754_v37  ;;  %v1620_v47 = vrot.slane %v3387_v39, %v3754_v37  ;;  %v2374_v48 = vor.u32 %v2373_v40, %v2369_v46  ;;  %v4194_v52 = vcombine.low %v1604_v42, %v4160_v23 }
 0x196   :  { %v1980_v26 = vrot.slane %v1952_v19, %v3754_v37  ;;  %v2015_v49 = vrot.slane %v4186_v35, %v3754_v37  ;;  %v1361_v50 = vpop.f32.mrf.mxu0  ;;  %v2541_v4 = vrot.slane %v3401_v18, %v3754_v37  ;;  %v2548_v5 = vrot.slane %v2520_v27, %v3754_v37 }
 0x197   :  { %v1621_v54 = vcombine.high %v1613_v51, %v1613_v51  ;;  %v1622_v55 = vcombine.high %v1620_v47, %v1620_v47  ;;  %v4200_v56 = vrot.slane %v1613_v51, %v3754_v37  ;;  %v4203_v57 = vrot.slane %v1620_v47, %v3754_v37 }
 0x198   :  { %v1982_v61 = vcombine.low %v4138_v45, %v1980_v26  ;;  %v3510_v2 = vpop.f32.mrf.mxu0  ;;  %v2379_v3 = vsel %vm2355_vm10, %v2374_v48, %v2378_v44  ;;  %v2008_v6 = vrot.slane %v4194_v52, %v3754_v37  ;;  %v2549_v12 = vcombine.low %v2527_v32, %v2534_v53 }
 0x199   :  { %v4212_v31 = vrot.slane %v1621_v54, %v3754_v37  ;;  %v4215_v7 = vrot.slane %v1622_v55, %v3754_v37  ;;  %v1651_v8 = vcombine.high %v4200_v56, %v4200_v56  ;;  %2454 = vrot.lane.b32.xlu1 %v2379_v3, %s3652_s1  ;;  %v1652_v45 = vcombine.high %v4203_v57, %v4203_v57 }
 0x19a   :  { %v4223_v9 = vcombine.low %v1605_v41, %v4200_v56  ;;  %v1364_v11 = vpop.f32.mrf.mxu0  ;;  %v2550_v30 = vcombine.low %v2541_v4, %v2548_v5  ;;  %v2557_v63 = vrot.slane %v2549_v12, %v3754_v37  ;;  %v1989_v24 = vrot.slane %v1981_v62, %v3754_v37 }
 0x19b   :  { %v4226_v13 = vcombine.low %v4212_v31, %v1651_v8  ;;  %v2047_v16 = vcombine.low %v4203_v57, %v4215_v7  ;;  %v3396_v17 = vcombine.high %v4203_v57, %v4215_v7  ;;  %v1397_v18 = vpack.c.bf16 %v1364_v11, %v1361_v50 }
 0x19c   :  { %v3388_v14 = vpack.c.bf16 %v1364_v11, %v1364_v11  ;;  %v3511_v20 = vpop.f32.mrf.mxu0  ;;  %v2564_v46 = vrot.slane %v2550_v30, %v3754_v37  ;;  %v2022_v25 = vrot.slane %v4223_v9, %v3754_v37  ;;  %v1996_v40 = vrot.slane %v1982_v61, %v3754_v37 }
 0x19d   :  { %v4241_v27 = vrot.slane %v2047_v16, %v3754_v37  ;;  %v4244_v28 = vrot.slane %v3396_v17, %v3754_v37  ;;  %v1662_v29 = vrot.slane %v1397_v18, %v3754_v37  ;;  %v2277_v58 = vrot.slane %v4179_v38, %v3754_v37 }
 0x19e   :  { %v1669_v32 = vrot.slane %v3388_v14, %v3754_v37  ;;  %v2565_v33 = vcombine.low %v2557_v63, %v2564_v46  ;;  %v1369_v39 = vpop.f32.mrf.mxu0  ;;  %v2029_v59 = vrot.slane %v4226_v13, %v3754_v37  ;;  %v1554_v19 = vcombine.high %v4105_v34, %v4105_v34 }
 0x19f   :  { %v2079_v62 = vcombine.low %v4241_v27, %v4244_v28  ;;  %v1670_v42 = vcombine.high %v1662_v29, %v1662_v29  ;;  %v4261_v51 = vcombine.low %v1989_v24, %v1996_v40  ;;  %v2284_v47 = vrot.slane %v2277_v58, %v3754_v37 }
 0x1a0   :  { %v1671_v43 = vcombine.high %v1669_v32, %v1669_v32  ;;  %v4258_v44 = vrot.slane %v1669_v32, %v3754_v37  ;;  %2862 = vrot.lane.b32.xlu1 %v2565_v33, %s3647_s27  ;;  %v3514_v41 = vpop.f32.mrf.mxu0  ;;  %v4265_v48 = vrot.slane %v1662_v29, %v3754_v37  ;;  %v1555_v50 = vcombine.high %v4110_v36, %v4110_v36 }
 0x1a1   :  { %v4268_v26 = vrot.slane %v1670_v42, %v3754_v37  ;;  %v1556_v53 = vcombine.high %v4113_v21, %v4113_v21  ;;  %v2383_v2 = vshll.u32 %v4261_v51, 16  ;;  %v2567_v3 = vcombine.low %v4113_v21, %v1554_v19 }
 0x1a2   :  { %v4275_v54 = vrot.slane %v1671_v43, %v3754_v37  ;;  %v1701_v55 = vcombine.high %v4258_v44, %v4258_v44  ;;  %v1372_v61 = vpop.f32.mrf.mxu0  ;;  %v2381_v12 = vshrl.u32 %v4261_v51, 16  ;;  %v2388_v16 = vshll.u32 %v2284_v47, 16 }
 0x1a3   :  { %v2049_v4 = vcombine.low %v4265_v48, %v4268_v26  ;;  %v3397_v36 = vcombine.high %v4265_v48, %v4268_v26  ;;  %v1398_v5 = vpack.c.bf16 %v1372_v61, %v1369_v39  ;;  %v3389_v8 = vpack.c.bf16 %v1372_v61, %v1372_v61 }
 0x1a4   :  { %v1703_v11 = vcombine.high %v4275_v54, %v4275_v54  ;;  %v2385_v30 = vrot.slane %v2383_v2, 1  ;;  %v3515_v17 = vpop.f32.mrf.mxu0  ;;  %v4292_v21 = vcombine.low %v4275_v54, %v1701_v55  ;;  %v2390_v24 = vrot.slane %v2388_v16, 1 }
 0x1a5   :  { %v4289_v18 = vrot.slane %v2049_v4, %v3754_v37  ;;  %v1711_v14 = vrot.slane %v1398_v5, %v3754_v37  ;;  %v1718_v20 = vrot.slane %v3389_v8, %v3754_v37  ;;  %v4297_v63 = vrot.slane %v3397_v36, %v3754_v37 }
 0x1a6   :  { %v2386_v46 = vor.u32 %v2385_v30, %v2381_v12  ;;  %v1377_v29 = vpop.f32.mrf.mxu0  ;;  %v2566_v32 = vcombine.low %v1555_v50, %v4105_v34  ;;  %v2568_v19 = vcombine.low %v1556_v53, %v4157_v22  ;;  %v2569_v43 = vcombine.low %v4168_v0, %v4179_v38 }
 0x1a7   :  { %v1719_v33 = vcombine.high %v1711_v14, %v1711_v14  ;;  %v1720_v39 = vcombine.high %v1718_v20, %v1718_v20  ;;  %v4301_v40 = vrot.slane %v1711_v14, %v3754_v37  ;;  %v4304_v58 = vrot.slane %v1718_v20, %v3754_v37 }
 0x1a8   :  { %v2391_v42 = vsel %vm2355_vm10, %v2386_v46, %v2390_v24  ;;  %v2576_v41 = vrot.slane %v2566_v32, %v3754_v37  ;;  %v3518_v47 = vpop.f32.mrf.mxu0  ;;  %v2106_v22 = vrot.slane %v4292_v21, %v3754_v37  ;;  %v2583_v0 = vrot.slane %v2567_v3, %v3754_v37 }
 0x1a9   :  { %v4312_v34 = vrot.slane %v1719_v33, %v3754_v37  ;;  %v4315_v50 = vrot.slane %v1720_v39, %v3754_v37  ;;  %v1749_v55 = vcombine.high %v4301_v40, %v4301_v40  ;;  %v4320_v61 = vcombine.low %v1703_v11, %v4301_v40  ;;  %2456 = vrot.lane.b32.xlu0 %v2391_v42, %s3652_s1 }
 0x1aa   :  { %v2590_v38 = vrot.slane %v2568_v19, %v3754_v37  ;;  %v2597_v53 = vrot.slane %v2569_v43, %v3754_v37  ;;  %v1380_v2 = vpop.f32.mrf.mxu0  ;;  %v1653_v8 = vcombine.high %v4212_v31, %v4212_v31  ;;  %v2598_v11 = vcombine.low %v2576_v41, %v2583_v0 }
 0x1ab   :  { %v1751_v4 = vcombine.high %v4312_v34, %v4312_v34  ;;  %v2098_v36 = vcombine.low %v4312_v34, %v1749_v55  ;;  %v3398_v5 = vcombine.high %v4304_v58, %v4315_v50  ;;  %v1399_v30 = vpack.c.bf16 %v1380_v2, %v1377_v29 }
 0x1ac   :  { %v2599_v12 = vcombine.low %v2590_v38, %v2597_v53  ;;  %v3390_v3 = vpack.c.bf16 %v1380_v2, %v1380_v2  ;;  %v3519_v16 = vpop.f32.mrf.mxu0  ;;  %v2113_v14 = vrot.slane %v4320_v61, %v3754_v37  ;;  %v2030_v46 = vcombine.low %v2008_v6, %v2015_v49 }
 0x1ad   :  { %v2099_v17 = vcombine.low %v1751_v4, %v4304_v58  ;;  %v2120_v20 = vrot.slane %v2098_v36, %v3754_v37  ;;  %v2606_v24 = vrot.slane %v2598_v11, %v3754_v37  ;;  %v1760_v32 = vrot.slane %v1399_v30, %v3754_v37 }
 0x1ae   :  { %v2613_v29 = vrot.slane %v2599_v12, %v3754_v37  ;;  %v1767_v33 = vrot.slane %v3390_v3, %v3754_v37  ;;  %v1385_v39 = vpop.f32.mrf.mxu0  ;;  %v4351_v19 = vrot.slane %v3398_v5, %v3754_v37  ;;  %v2031_v35 = vcombine.low %v2022_v25, %v2029_v59 }
 0x1af   :  { %v2127_v42 = vrot.slane %v2099_v17, %v3754_v37  ;;  %v2291_v52 = vrot.slane %v1653_v8, %v3754_v37  ;;  %v1768_v6 = vcombine.high %v1760_v32, %v1760_v32  ;;  %v2038_v41 = vrot.slane %v2030_v46, %v3754_v37 }
 0x1b0   :  { %v2614_v49 = vcombine.low %v2606_v24, %v2613_v29  ;;  %v1769_v43 = vcombine.high %v1767_v33, %v1767_v33  ;;  %v3522_v47 = vpop.f32.mrf.mxu0  ;;  %v4362_v55 = vrot.slane %v1760_v32, %v3754_v37  ;;  %v4365_v0 = vrot.slane %v1767_v33, %v3754_v37 }
 0x1b1   :  { %v2045_v13 = vrot.slane %v2031_v35, %v3754_v37  ;;  %v2298_v38 = vrot.slane %v2291_v52, %v3754_v37  ;;  %v4369_v9 = vcombine.low %v2120_v20, %v2127_v42  ;;  %v4373_v25 = vrot.slane %v1768_v6, %v3754_v37 }
 0x1b2   :  { %2864 = vrot.lane.b32.xlu0 %v2614_v49, %s3647_s27  ;;  %v4376_v59 = vrot.slane %v1769_v43, %v3754_v37  ;;  %v2615_v53 = vcombine.low %v4160_v23, %v4171_v60  ;;  %v1388_v2 = vpop.f32.mrf.mxu0  ;;  %v3402_v5 = vcombine.high %v4160_v23, %v4171_v60  ;;  %v2617_v8 = vcombine.low %v4200_v56, %v4212_v31 }
 0x1b3   :  { %v4380_v4 = vcombine.low %v2038_v41, %v2045_v13  ;;  %v2400_v36 = vshll.u32 %v2298_v38, 16  ;;  %v4388_v11 = vcombine.high %v4365_v0, %v4365_v0  ;;  %v2146_v12 = vcombine.low %v4362_v55, %v4373_v25 }
 0x1b4   :  { %v3399_v30 = vcombine.high %v4362_v55, %v4373_v25  ;;  %v2148_v3 = vcombine.low %v4365_v0, %v4376_v59  ;;  %v3523_v16 = vpop.f32.mrf.mxu0  ;;  %v1801_v23 = vcombine.high %v4376_v59, %v4376_v59  ;;  %v3403_v20 = vcombine.high %v4200_v56, %v4212_v31 }
 0x1b5   :  { %v2393_v60 = vshrl.u32 %v4380_v4, 16  ;;  %v2395_v17 = vshll.u32 %v4380_v4, 16  ;;  %v2402_v29 = vrot.slane %v2400_v36, 1  ;;  %v2625_v32 = vrot.slane %v2615_v53, %v3754_v37 }
 0x1b6   :  { %v4403_v46 = vrot.slane %v3399_v30, %v3754_v37  ;;  %v4406_v24 = vrot.slane %v2148_v3, %v3754_v37  ;;  %v2632_v42 = vrot.slane %v3402_v5, %v3754_v37  ;;  %v2639_v35 = vrot.slane %v2617_v8, %v3754_v37 }
 0x1b7   :  { %v2397_v33 = vrot.slane %v2395_v17, 1  ;;  %v2646_v52 = vrot.slane %v3403_v20, %v3754_v37  ;;  %v4413_v49 = vrot.slane %v2146_v12, %v3754_v37  ;;  %v1400_v56 = vpack.c.bf16 %v1388_v2, %v1385_v39 }
 0x1b8   :  { %v3391_v31 = vpack.c.bf16 %v1388_v2, %v1388_v2  ;;  %v2080_v6 = vcombine.low %v4289_v18, %v4297_v63  ;;  %v2178_v43 = vcombine.low %v4403_v46, %v4406_v24  ;;  %v2647_v47 = vcombine.low %v2625_v32, %v2632_v42 }
 0x1b9   :  { %v2398_v41 = vor.u32 %v2397_v33, %v2393_v60  ;;  %v2648_v13 = vcombine.low %v2639_v35, %v2646_v52  ;;  %v1809_v38 = vrot.slane %v1400_v56, %v3754_v37  ;;  %v2305_v5 = vrot.slane %v4258_v44, %v3754_v37 }
 0x1ba   :  { %v1816_v53 = vrot.slane %v3391_v31, %v3754_v37  ;;  %v2094_v36 = vrot.slane %v2080_v6, %v3754_v37  ;;  %v2655_v2 = vrot.slane %v2647_v47, %v3754_v37  ;;  %v2087_v63 = vrot.slane %v2079_v62, %v3754_v37 }
 0x1bb   :  { %v2403_v39 = vsel %vm2355_vm10, %v2398_v41, %v2402_v29  ;;  %v2662_v18 = vrot.slane %v2648_v13, %v3754_v37  ;;  %v1817_v8 = vcombine.high %v1809_v38, %v1809_v38  ;;  %v4433_v30 = vrot.slane %v1809_v38, %v3754_v37 }
 0x1bc   :  { %2458 = vrot.lane.b32.xlu1 %v2403_v39, %s3652_s1  ;;  %v1818_v12 = vcombine.high %v1816_v53, %v1816_v53  ;;  %v4436_v3 = vrot.slane %v1816_v53, %v3754_v37  ;;  %v4438_v60 = vcombine.low %v2087_v63, %v2094_v36  ;;  %v2312_v17 = vrot.slane %v2305_v5, %v3754_v37 }
 0x1bd   :  { %v2663_v16 = vcombine.low %v2655_v2, %v2662_v18  ;;  %v1654_v20 = vcombine.high %v4215_v7, %v4215_v7  ;;  %v4444_v27 = vrot.slane %v1817_v8, %v3754_v37  ;;  %v1847_v62 = vcombine.high %v4433_v30, %v4433_v30 }
 0x1be   :  { %v4447_v28 = vrot.slane %v1818_v12, %v3754_v37  ;;  %v1848_v29 = vcombine.high %v4436_v3, %v4436_v3  ;;  %v4454_v32 = vcombine.low %v1801_v23, %v4433_v30  ;;  %v2407_v33 = vshll.u32 %v4438_v60, 16 }
 0x1bf   :  { %v2412_v42 = vshll.u32 %v2312_v17, 16  ;;  %v1700_v35 = vcombine.high %v4265_v48, %v4265_v48  ;;  %v1849_v52 = vcombine.high %v4444_v27, %v4444_v27  ;;  %v4463_v56 = vcombine.low %v4444_v27, %v1847_v62 }
 0x1c0   :  { %2866 = vrot.lane.b32.xlu1 %v2663_v16, %s3647_s27  ;;  %v4466_v31 = vcombine.low %v4447_v28, %v1848_v29  ;;  %v1702_v23 = vcombine.high %v4268_v26, %v4268_v26  ;;  %v2204_v6 = vrot.slane %v4454_v32, %v3754_v37  ;;  %v2405_v41 = vshrl.u32 %v4438_v60, 16 }
 0x1c1   :  { %v2409_v47 = vrot.slane %v2407_v33, 1  ;;  %v2664_v13 = vcombine.low %v4215_v7, %v1652_v45  ;;  %v4478_v38 = vcombine.low %v1849_v52, %v4436_v3  ;;  %v2211_v53 = vrot.slane %v4463_v56, %v3754_v37 }
 0x1c2   :  { %v2414_v36 = vrot.slane %v2412_v42, 1  ;;  %v2665_v5 = vcombine.low %v1654_v20, %v4265_v48  ;;  %v2225_v39 = vrot.slane %v4466_v31, %v3754_v37  ;;  %v2666_v18 = vcombine.low %v4268_v26, %v1700_v35 }
 0x1c3   :  { %v2410_v2 = vor.u32 %v2409_v47, %v2405_v41  ;;  %v2667_v63 = vcombine.low %v1702_v23, %v4258_v44  ;;  %v2674_v57 = vrot.slane %v2664_v13, %v3754_v37  ;;  %v2128_v45 = vcombine.low %v2106_v22, %v2113_v14 }
 0x1c4   :  { %v2681_v7 = vrot.slane %v2665_v5, %v3754_v37  ;;  %v2143_v48 = vrot.slane %v4369_v9, %v3754_v37  ;;  %v2688_v26 = vrot.slane %v2666_v18, %v3754_v37  ;;  %v2319_v16 = vrot.slane %v4315_v50, %v3754_v37 }
 0x1c5   :  { %v2415_v8 = vsel %vm2355_vm10, %v2410_v2, %v2414_v36  ;;  %v2695_v12 = vrot.slane %v2667_v63, %v3754_v37  ;;  %v2136_v61 = vrot.slane %v2128_v45, %v3754_v37  ;;  %v3404_v21 = vcombine.high %v4258_v44, %v4275_v54 }
 0x1c6   :  { %2460 = vrot.lane.b32.xlu0 %v2415_v8, %s3652_s1  ;;  %v2696_v17 = vcombine.low %v2674_v57, %v2681_v7  ;;  %v2714_v22 = vcombine.low %v4301_v40, %v4312_v34  ;;  %v2326_v9 = vrot.slane %v2319_v16, %v3754_v37  ;;  %v3405_v20 = vcombine.high %v4301_v40, %v4312_v34 }
 0x1c7   :  { %v2697_v14 = vcombine.low %v2688_v26, %v2695_v12  ;;  %v2716_v62 = vcombine.low %v4304_v58, %v4315_v50  ;;  %v4514_v33 = vcombine.low %v2136_v61, %v2143_v48  ;;  %v2723_v42 = vrot.slane %v3404_v21, %v3754_v37 }
 0x1c8   :  { %v2704_v29 = vrot.slane %v2696_v17, %v3754_v37  ;;  %v2730_v44 = vrot.slane %v2714_v22, %v3754_v37  ;;  %v2424_v35 = vshll.u32 %v2326_v9, 16  ;;  %v2737_v52 = vrot.slane %v3405_v20, %v3754_v37 }
 0x1c9   :  { %v2711_v54 = vrot.slane %v2697_v14, %v3754_v37  ;;  %v2744_v23 = vrot.slane %v2716_v62, %v3754_v37  ;;  %v2417_v40 = vshrl.u32 %v4514_v33, 16  ;;  %v2419_v34 = vshll.u32 %v4514_v33, 16 }
 0x1ca   :  { %v2745_v58 = vcombine.low %v2723_v42, %v2730_v44  ;;  %v2177_v41 = vcombine.low %v4351_v19, %v4413_v49  ;;  %v2426_v13 = vrot.slane %v2424_v35, 1  ;;  %v2192_v5 = vrot.slane %v2178_v43, %v3754_v37 }
 0x1cb   :  { %v2712_v47 = vcombine.low %v2704_v29, %v2711_v54  ;;  %v2746_v36 = vcombine.low %v2737_v52, %v2744_v23  ;;  %v2421_v2 = vrot.slane %v2419_v34, 1  ;;  %v2333_v57 = vrot.slane %v4388_v11, %v3754_v37 }
 0x1cc   :  { %v2753_v18 = vrot.slane %v2745_v58, %v3754_v37  ;;  %v2185_v63 = vrot.slane %v2177_v41, %v3754_v37  ;;  %v1752_v49 = vcombine.high %v4315_v50, %v4315_v50  ;;  %v1798_v7 = vcombine.high %v4362_v55, %v4362_v55 }
 0x1cd   :  { %2868 = vrot.lane.b32.xlu0 %v2712_v47, %s3647_s27  ;;  %v2760_v19 = vrot.slane %v2746_v36, %v3754_v37  ;;  %v1800_v46 = vcombine.high %v4373_v25, %v4373_v25  ;;  %v2422_v24 = vor.u32 %v2421_v2, %v2417_v40  ;;  %v2340_v45 = vrot.slane %v2333_v57, %v3754_v37 }
 0x1ce   :  { %v4541_v43 = vcombine.low %v2185_v63, %v2192_v5  ;;  %v2765_v48 = vcombine.low %v4376_v59, %v4388_v11  ;;  %v2218_v8 = vrot.slane %v4478_v38, %v3754_v37  ;;  %v2762_v26 = vcombine.low %v1752_v49, %v4362_v55 }
 0x1cf   :  { %v2763_v50 = vcombine.low %v4373_v25, %v1798_v7  ;;  %v2764_v12 = vcombine.low %v1800_v46, %v4365_v0  ;;  %v2427_v16 = vsel %vm2355_vm10, %v2422_v24, %v2426_v13  ;;  %v2761_v17 = vcombine.low %v2753_v18, %v2760_v19 }
 0x1d0   :  { %v2431_v61 = vshll.u32 %v4541_v43, 16  ;;  %v2436_v21 = vshll.u32 %v2340_v45, 16  ;;  %2462 = vrot.lane.b32.xlu1 %v2427_v16, %s3652_s1  ;;  %v2772_v22 = vrot.slane %v2762_v26, %v3754_v37  ;;  %v2793_v55 = vrot.slane %v2765_v48, %v3754_v37 }
 0x1d1   :  { %v2779_v59 = vrot.slane %v2763_v50, %v3754_v37  ;;  %v2786_v11 = vrot.slane %v2764_v12, %v3754_v37  ;;  %v2429_v25 = vshrl.u32 %v4541_v43, 16  ;;  %v1850_v0 = vcombine.high %v4447_v28, %v4447_v28 }
 0x1d2   :  { %v2433_v38 = vrot.slane %v2431_v61, 1  ;;  %v2226_v14 = vcombine.low %v2204_v6, %v2211_v53  ;;  %v2227_v62 = vcombine.low %v2218_v8, %v2225_v39  ;;  %v2811_v29 = vcombine.low %v4433_v30, %v4444_v27 }
 0x1d3   :  { %v2794_v9 = vcombine.low %v2772_v22, %v2779_v59  ;;  %v2795_v20 = vcombine.low %v2786_v11, %v2793_v55  ;;  %v2438_v44 = vrot.slane %v2436_v21, 1  ;;  %v2347_v54 = vrot.slane %v1850_v0, %v3754_v37 }
 0x1d4   :  { %v2434_v42 = vor.u32 %v2433_v38, %v2429_v25  ;;  %v3406_v56 = vcombine.high %v4433_v30, %v4444_v27  ;;  %2870 = vrot.lane.b32.xlu1 %v2761_v17, %s3647_s27  ;;  %v2234_v6 = vrot.slane %v2226_v14, %v3754_v37  ;;  %v2241_v53 = vrot.slane %v2227_v62, %v3754_v37 }
 0x1d5   :  { %v2809_v32 = vrot.slane %v2795_v20, %v3754_v37  ;;  %v2813_v31 = vcombine.low %v4436_v3, %v4447_v28  ;;  %v2354_v35 = vrot.slane %v2347_v54, %v3754_v37  ;;  %v3407_v52 = vcombine.high %v4436_v3, %v4447_v28  ;;  %v3597_v54 = vld [vmem:[%s4701_s5 + $0x20] sm:$0xff]  }
 0x1d6   :  { %v2439_v39 = vsel %vm2355_vm10, %v2434_v42, %v2438_v44  ;;  %v2821_v30 = vrot.slane %v2811_v29, %v3754_v37  ;;  %v2802_v27 = vrot.slane %v2794_v9, %v3754_v37  ;;  %v2242_v23 = vcombine.low %v2234_v6, %v2241_v53  ;;  %v3595_v42 = vld [vmem:[%s4701_s5 + $0x30] sm:$0xff]   ;;  %v3596_v44 = vld [vmem:[%s4701_s5 + $0x28] sm:$0xff]   ;;  %v3601_v53 = vld [vmem:[%s4701_s5] sm:$0xff]  }
 0x1d7   :  { %2464 = vrot.lane.b32.xlu0 %v2439_v39, %s3652_s1  ;;  %v2828_v40 = vrot.slane %v3406_v56, %v3754_v37  ;;  %v2835_v34 = vrot.slane %v2813_v31, %v3754_v37  ;;  %v2842_v58 = vrot.slane %v3407_v52, %v3754_v37  ;;  %v2448_v13 = vshll.u32 %v2354_v35, 16  ;;  %v3598_v56 = vld [vmem:[%s4701_s5 + $0x18] sm:$0xff]   ;;  %v3600_v6 = vld [vmem:[%s4701_s5 + $0x8] sm:$0xff]  }
 0x1d8   :  { %v2810_v41 = vcombine.low %v2802_v27, %v2809_v32  ;;  %v2443_v47 = vshll.u32 %v2242_v23, 16  ;;  %v2441_v3 = vshrl.u32 %v2242_v23, 16  ;;  %v3599_v32 = vld [vmem:[%s4701_s5 + $0x10] sm:$0xff]  }
 0x1d9   :  { %v2843_v36 = vcombine.low %v2821_v30, %v2828_v40  ;;  %v2844_v5 = vcombine.low %v2835_v34, %v2842_v58  ;;  %v2450_v18 = vrot.slane %v2448_v13, 1  ;;  %v4664_v40 = vld [vmem:[%s4699_s3 + $0x8] sm:$0xff]  ;;  %v4669_v58 = vld [vmem:[%s4699_s3] sm:$0xff] }
 0x1da   :  { %v2445_v28 = vrot.slane %v2443_v47, 1 }
 0x1db   :  { %2872 = vrot.lane.b32.xlu0 %v2810_v41, %s3647_s27  ;;  %v2851_v63 = vrot.slane %v2843_v36, %v3754_v37  ;;  %v2858_v57 = vrot.slane %v2844_v5, %v3754_v37 }
 0x1dc   :  { %v2446_v2 = vor.u32 %v2445_v28, %v2441_v3 }
 0x1dd   :  { %v2859_v49 = vcombine.low %v2851_v63, %v2858_v57 }
 0x1de   :  { %v2451_v19 = vsel %vm2355_vm10, %v2446_v2, %v2450_v18 }
 0x1df   :  { %2466 = vrot.lane.b32.xlu1 %v2451_v19, %s3652_s1 }
 0x1e3   :  { %2874 = vrot.lane.b32.xlu1 %v2859_v49, %s3647_s27 }
 0x1fd   :  { %v2453_v7 = vpop.permute.xlu0 %2452 }
 0x1fe   :  { %v2878_v46 = vsel %vm2876_vm11, %v4083_v10, %v2453_v7 }
 0x202   :  { %v2861_v24 = vpop.permute.xlu0 %2860 }
 0x203   :  { %v2895_v45 = vsel %vm2893_vm12, %v2878_v46, %v2861_v24 }
 0x204   :  { %3536 = vmatprep.mubr.msk.bf16.mxu1 %vm2958_vm13, %v2895_v45 }
 0x20b   :  { %v2455_v37 = vpop.permute.xlu1 %2454 }
 0x20c   :  { %v2880_v48 = vsel %vm2876_vm11, %v4149_v15, %v2455_v37 }
 0x212   :  { %v2863_v8 = vpop.permute.xlu1 %2862 }
 0x213   :  { %v2897_v26 = vsel %vm2893_vm12, %v2880_v48, %v2863_v8 }
 0x214   :  { %3537 = vmatmul.mubr.msk.bf16.vlgmr.msra.gmra.mxu1 %vm2958_vm13, %v2897_v26 }
 0x21b   :  { %v2457_v50 = vpop.permute.xlu0 %2456 }
 0x21c   :  { %v2882_v12 = vsel %vm2876_vm11, %v4261_v51, %v2457_v50 }
 0x224   :  { %v2865_v16 = vpop.permute.xlu0 %2864 }
 0x225   :  { %v2899_v10 = vsel %vm2893_vm12, %v2882_v12, %v2865_v16 }
 0x226   :  { %3540 = vmatprep.mubr.msk.bf16.mxu1 %vm2958_vm13, %v2899_v10 }
 0x22e   :  { %v2459_v17 = vpop.permute.xlu1 %2458 }
 0x22f   :  { %v2884_v61 = vsel %vm2876_vm11, %v4380_v4, %v2459_v17 }
 0x232   :  { %v2867_v21 = vpop.permute.xlu1 %2866 }
 0x233   :  { %v2901_v15 = vsel %vm2893_vm12, %v2884_v61, %v2867_v21 }
 0x234   :  { %3541 = vmatmul.mubr.msk.bf16.gmra.mxu1 %vm2958_vm13, %v2901_v15 }
 0x238   :  { %v2461_v22 = vpop.permute.xlu0 %2460 }
 0x239   :  { %v2886_v59 = vsel %vm2876_vm11, %v4438_v60, %v2461_v22 }
 0x23f   :  { %v2869_v11 = vpop.permute.xlu0 %2868 }
 0x240   :  { %v2903_v51 = vsel %vm2893_vm12, %v2886_v59, %v2869_v11 }
 0x241   :  { %3544 = vmatprep.mubr.msk.bf16.mxu1 %vm2958_vm13, %v2903_v51 }
 0x242   :  { %v2463_v55 = vpop.permute.xlu1 %2462 }
 0x243   :  { %v2888_v25 = vsel %vm2876_vm11, %v4514_v33, %v2463_v55 }
 0x246   :  { %v2871_v38 = vpop.permute.xlu1 %2870 }
 0x247   :  { %v2905_v4 = vsel %vm2893_vm12, %v2888_v25, %v2871_v38 }
 0x248   :  { %3545 = vmatmul.mubr.msk.bf16.gmra.mxu1 %vm2958_vm13, %v2905_v4 }
 0x249   :  { %v2465_v0 = vpop.permute.xlu0 %2464 }
 0x24a   :  { %v2890_v14 = vsel %vm2876_vm11, %v4541_v43, %v2465_v0  ;;  %v3594_v43 = vld [vmem:[%s4701_s5 + $0x38] sm:$0xff]  }
 0x24b   :  { %3553 = vmatpush3.bf16.msra.mxu1 %v3594_v43 }
 0x24c   :  { %3554 = vmatprep.subr.bf16.mxu1 %v3649_v1 }
 0x24d   :  { %v2873_v9 = vpop.permute.xlu0 %2872 }
 0x24e   :  { %v2907_v60 = vsel %vm2893_vm12, %v2890_v14, %v2873_v9 }
 0x24f   :  { %3548 = vmatprep.mubr.msk.bf16.mxu1 %vm2958_vm13, %v2907_v60  ;;  %3555 = vmatpush3.bf16.msra.mxu1 %v3595_v42 }
 0x250   :  { %3556 = vmatprep.subr.bf16.mxu1 %v3649_v1 }
 0x251   :  { %v2467_v20 = vpop.permute.xlu1 %2466 }
 0x252   :  { %v2892_v62 = vsel %vm2876_vm11, %v2242_v23, %v2467_v20 }
 0x253   :  { %3557 = vmatpush3.bf16.msra.mxu1 %v3596_v44 }
 0x254   :  { %3558 = vmatprep.subr.bf16.mxu1 %v3649_v1 }
 0x255   :  { %v2875_v29 = vpop.permute.xlu1 %2874 }
 0x256   :  { %v2909_v33 = vsel %vm2893_vm12, %v2892_v62, %v2875_v29 }
 0x257   :  { %3549 = vmatmul.mubr.msk.bf16.gmra.mxu1 %vm2958_vm13, %v2909_v33 }
 0x258   :  { %3568 = vmatprep.mubr.msk.bf16.mxu1 %vm3650_vm0, %v3649_v1  ;;  %3559 = vmatpush3.bf16.msra.mxu1 %v3597_v54  ;;  %vm3209_vm0 = vcmask 1041409  }
 0x259   :  { %3560 = vmatprep.subr.bf16.mxu1 %v3649_v1 }
 0x25c   :  { %3561 = vmatpush3.bf16.msra.mxu1 %v3598_v56 }
 0x25d   :  { %3562 = vmatprep.subr.bf16.mxu1 %v3649_v1 }
 0x260   :  { %3563 = vmatpush3.bf16.msra.mxu1 %v3599_v32 }
 0x261   :  { %3564 = vmatprep.subr.bf16.mxu1 %v3649_v1 }
 0x264   :  { %3565 = vmatpush3.bf16.msra.mxu1 %v3600_v6  ;;  %v3422_v6 = vld [vmem:[%s4700_s4] ss:$0 sm:$0xff] }
 0x265   :  { %3566 = vmatprep.subr.bf16.mxu1 %v3649_v1 }
 0x268   :  { %3567 = vmatpush3.bf16.msra.mxu1 %v3601_v53 }
 0x2d4   :  { %v3538_v31 = vpop.f32.mrf.mxu1 }
 0x2d5   :  { %v3076_v47 = vadd.f32 %v3538_v31, %v4669_v58 }
 0x2d6   :  { %v3009_v39 = vpop.f32.mrf.mxu1 }
 0x2d7   :  { %v3074_v28 = vadd.f32 %v4669_v58, %v3009_v39 }
 0x2d8   :  { %v3539_v35 = vpop.f32.mrf.mxu1 }
 0x2d9   :  { %v3077_v1 = vadd.f32 %v3539_v35, %v4664_v40 }
 0x2da   :  { %v3012_v52 = vpop.f32.mrf.mxu1 }
 0x2db   :  { %v3097_v36 = vmax.f32 %v3076_v47, %v3077_v1  ;;  %v3075_v5 = vadd.f32 %v4664_v40, %v3012_v52 }
 0x2dd   :  { %v3098_v18 = vrot.slane %v3097_v36, 4  ;;  %v3090_v63 = vmax.f32 %v3074_v28, %v3075_v5 }
 0x2df   :  { %v3099_v7 = vmax.f32 %v3097_v36, %v3098_v18  ;;  %v3091_v24 = vrot.slane %v3090_v63, 4 }
 0x2e1   :  { %v3100_v8 = vrot.slane %v3099_v7, 2  ;;  %v3092_v50 = vmax.f32 %v3090_v63, %v3091_v24 }
 0x2e3   :  { %v3101_v59 = vmax.f32 %v3099_v7, %v3100_v8  ;;  %v3093_v11 = vrot.slane %v3092_v50, 2 }
 0x2e5   :  { %v3102_v14 = vrot.slane %v3101_v59, 1  ;;  %v3094_v9 = vmax.f32 %v3092_v50, %v3093_v11 }
 0x2e7   :  { %v3103_v42 = vmax.f32 %v3101_v59, %v3102_v14  ;;  %v3095_v44 = vrot.slane %v3094_v9, 1 }
 0x2f4   :  { %v3542_v30 = vpop.f32.mrf.mxu1 }
 0x2f5   :  { %v3080_v57 = vadd.f32 %v3542_v30, %v4669_v58 }
 0x2f6   :  { %v3025_v27 = vpop.f32.mrf.mxu1 }
 0x2f7   :  { %v3078_v13 = vadd.f32 %v4669_v58, %v3025_v27  ;;  %v3154_v27 = vadd.f32 %v3422_v6, %v3103_v42 }
 0x2f8   :  { %v3543_v23 = vpop.f32.mrf.mxu1 }
 0x2f9   :  { %v3081_v2 = vadd.f32 %v3543_v23, %v4664_v40  ;;  %v3096_v23 = vmax.f32 %v3094_v9, %v3095_v44  ;;  %v3162_v18 = vpack.c.bf16 %v3154_v27, %v3154_v27 }
 0x2fa   :  { %v3028_v34 = vpop.f32.mrf.mxu1 }
 0x2fb   :  { %v3079_v41 = vadd.f32 %v4664_v40, %v3028_v34  ;;  %v3111_v49 = vmax.f32 %v3080_v57, %v3081_v2  ;;  %v3153_v63 = vadd.f32 %v3422_v6, %v3096_v23 }
 0x2fd   :  { %v3104_v3 = vmax.f32 %v3078_v13, %v3079_v41  ;;  %v3112_v48 = vrot.slane %v3111_v49, 4  ;;  %v3161_v8 = vpack.c.bf16 %v3153_v63, %v3153_v63 }
 0x2ff   :  { %v3105_v19 = vrot.slane %v3104_v3, 4  ;;  %v3113_v61 = vmax.f32 %v3111_v49, %v3112_v48  ;;  %v3201_v48 = vunpack.c.l.b16 %v3162_v18 }
 0x301   :  { %v3106_v45 = vmax.f32 %v3104_v3, %v3105_v19  ;;  %v3114_v38 = vrot.slane %v3113_v61, 2 }
 0x303   :  { %v3107_v12 = vrot.slane %v3106_v45, 2  ;;  %v3115_v62 = vmax.f32 %v3113_v61, %v3114_v38  ;;  %v3208_v61 = vrot.slane %v3201_v48, 7 }
 0x305   :  { %v3108_v51 = vmax.f32 %v3106_v45, %v3107_v12  ;;  %v3116_v53 = vrot.slane %v3115_v62, 1 }
 0x307   :  { %v3109_v60 = vrot.slane %v3108_v51, 1  ;;  %v3117_v5 = vmax.f32 %v3115_v62, %v3116_v53 }
 0x308   :  { %v3546_v46 = vpop.f32.mrf.mxu1 }
 0x309   :  { %v3084_v16 = vadd.f32 %v3546_v46, %v4669_v58  ;;  %v3110_v54 = vmax.f32 %v3108_v51, %v3109_v60  ;;  %v3156_v46 = vadd.f32 %v3422_v6, %v3117_v5 }
 0x30a   :  { %v3041_v37 = vpop.f32.mrf.mxu1 }
 0x30b   :  { %v3082_v21 = vadd.f32 %v4669_v58, %v3041_v37  ;;  %v3155_v34 = vadd.f32 %v3422_v6, %v3110_v54  ;;  %v3164_v12 = vpack.c.bf16 %v3156_v46, %v3156_v46 }
 0x30c   :  { %v3547_v26 = vpop.f32.mrf.mxu1 }
 0x30d   :  { %v3085_v10 = vadd.f32 %v3547_v26, %v4664_v40  ;;  %v3163_v57 = vpack.c.bf16 %v3155_v34, %v3155_v34  ;;  %v3203_v51 = vunpack.c.l.b16 %v3164_v12 }
 0x30e   :  { %v3044_v17 = vpop.f32.mrf.mxu1 }
 0x30f   :  { %v3125_v15 = vmax.f32 %v3084_v16, %v3085_v10  ;;  %v3083_v22 = vadd.f32 %v4664_v40, %v3044_v17 }
 0x311   :  { %v3126_v55 = vrot.slane %v3125_v15, 4  ;;  %v3118_v25 = vmax.f32 %v3082_v21, %v3083_v22  ;;  %v3200_v21 = vunpack.c.l.b16 %v3161_v8 }
 0x313   :  { %v3127_v4 = vmax.f32 %v3125_v15, %v3126_v55  ;;  %v3119_v0 = vrot.slane %v3118_v25, 4 }
 0x315   :  { %v3120_v20 = vmax.f32 %v3118_v25, %v3119_v0  ;;  %v3128_v29 = vrot.slane %v3127_v4, 2 }
 0x317   :  { %v3121_v33 = vrot.slane %v3120_v20, 2  ;;  %v3550_v43 = vpop.f32.mrf.mxu1  ;;  %v3129_v31 = vmax.f32 %v3127_v4, %v3128_v29  ;;  %v3210_v4 = vsel %vm3209_vm0, %v3208_v61, %v3200_v21 }
 0x318   :  { %v3088_v52 = vadd.f32 %v3550_v43, %v4669_v58 }
 0x319   :  { %v3122_v56 = vmax.f32 %v3120_v20, %v3121_v33  ;;  %v3057_v32 = vpop.f32.mrf.mxu1  ;;  %v3130_v3 = vrot.slane %v3129_v31, 1  ;;  %v3214_v20 = vrot.slane %v3203_v51, 5 }
 0x31a   :  { %v3086_v47 = vadd.f32 %v4669_v58, %v3057_v32  ;;  %v3202_v58 = vunpack.c.l.b16 %v3163_v57 }
 0x31b   :  { %v3123_v39 = vrot.slane %v3122_v56, 1  ;;  %v3551_v35 = vpop.f32.mrf.mxu1  ;;  %v3131_v24 = vmax.f32 %v3129_v31, %v3130_v3 }
 0x31c   :  { %v3089_v30 = vadd.f32 %v3551_v35, %v4664_v40  ;;  %v3211_v15 = vrot.slane %v3202_v58, 6 }
 0x31d   :  { %v3060_v1 = vpop.f32.mrf.mxu1  ;;  %v3124_v41 = vmax.f32 %v3122_v56, %v3123_v39  ;;  %v3158_v16 = vadd.f32 %v3422_v6, %v3131_v24 }
 0x31e   :  { %v3139_v13 = vmax.f32 %v3088_v52, %v3089_v30  ;;  %v3087_v36 = vadd.f32 %v4664_v40, %v3060_v1  ;;  %v3213_v0 = vsel %vm3212_vm14, %v3211_v15, %v3210_v4 }
 0x31f   :  { %v3157_v19 = vadd.f32 %v3422_v6, %v3124_v41  ;;  %v3166_v55 = vpack.c.bf16 %v3158_v16, %v3158_v16  ;;  %v3216_v33 = vsel %vm3215_vm15, %v3214_v20, %v3213_v0 }
 0x320   :  { %v3140_v28 = vrot.slane %v3139_v13, 4  ;;  %v3132_v2 = vmax.f32 %v3086_v47, %v3087_v36 }
 0x321   :  { %v3165_v26 = vpack.c.bf16 %v3157_v19, %v3157_v19  ;;  %v3205_v62 = vunpack.c.l.b16 %v3166_v55 }
 0x322   :  { %v3141_v49 = vmax.f32 %v3139_v13, %v3140_v28  ;;  %v3133_v7 = vrot.slane %v3132_v2, 4 }
 0x323   :  { %v3204_v22 = vunpack.c.l.b16 %v3165_v26  ;;  %v3220_v54 = vrot.slane %v3205_v62, 3 }
 0x324   :  { %v3142_v45 = vrot.slane %v3141_v49, 2  ;;  %v3134_v37 = vmax.f32 %v3132_v2, %v3133_v7 }
 0x325   :  { %v3217_v14 = vrot.slane %v3204_v22, 4 }
 0x326   :  { %v3143_v50 = vmax.f32 %v3141_v49, %v3142_v45  ;;  %v3135_v40 = vrot.slane %v3134_v37, 2 }
 0x327   :  { %v3219_v42 = vsel %vm3218_vm1, %v3217_v14, %v3216_v33 }
 0x328   :  { %v3144_v10 = vrot.slane %v3143_v50, 1  ;;  %v3136_v17 = vmax.f32 %v3134_v37, %v3135_v40  ;;  %v3222_v53 = vsel %vm3221_vm2, %v3220_v54, %v3219_v42 }
 0x32a   :  { %v3145_v59 = vmax.f32 %v3143_v50, %v3144_v10  ;;  %v3137_v11 = vrot.slane %v3136_v17, 1 }
 0x32c   :  { %v3160_v25 = vadd.f32 %v3422_v6, %v3145_v59  ;;  %v3138_v38 = vmax.f32 %v3136_v17, %v3137_v11 }
 0x32e   :  { %v3168_v9 = vpack.c.bf16 %v3160_v25, %v3160_v25  ;;  %v3159_v60 = vadd.f32 %v3422_v6, %v3138_v38  ;;  %v3423_v6 = vld [vmem:[%s4702_s6] ss:$0 sm:$0xff] }
 0x330   :  { %v3167_v29 = vpack.c.bf16 %v3159_v60, %v3159_v60  ;;  %v3207_v43 = vunpack.c.l.b16 %v3168_v9 }
 0x332   :  { %v3206_v44 = vunpack.c.l.b16 %v3167_v29  ;;  %v3226_v32 = vrot.slane %v3207_v43, 1 }
 0x334   :  { %v3223_v56 = vrot.slane %v3206_v44, 2 }
 0x336   :  { %v3225_v31 = vsel %vm3224_vm3, %v3223_v56, %v3222_v53 }
 0x337   :  { %v3228_v39 = vsel %vm3227_vm4, %v3226_v32, %v3225_v31 }
 0x338   :  { %v3229_v35 = vpack.c.b16 %v3228_v39, %v3228_v39 }
 0x33a   :  { %3569 = vmatmul.mubr.bf16.vlgmr.msra.gmra.mxu1 %v3229_v35 }
 0x3fa   :  { %v3313_v52 = vpop.f32.mrf.mxu1 }
 0x3fb   :  { %v3314_v30 = vadd.f32 %v3423_v6, %v3313_v52 }
 0x3fc   :  { %v3570_v27 = vpop.f32.mrf.mxu1 }
 0x3fd   :  { %3319 = vst [vmem:[#allocation5] sm:$0xff] %v3314_v30 }
 0x3fe   :  { %v3316_v23 = vpop.f32.mrf.mxu1 }
 0x3ff   :  { %3633 = shalt.err (!%p3630_p9)
}
 0x400   :  { %3329 = dma.vmem_to_hbm [thread:$0]  %s3327_s21, 128, %s4703_s7, [#allocation4]   ;;  %v3571_v34 = vpop.f32.mrf.mxu1 }
 0x401   :  { %3644 = dma.done.wait [#allocation4], 128  }
 0x402   :  { %3645 = vsyncadd [#allocation4], 4294967168 }
 0x403   :  { %3333 = vsyncpa [#allocation3], 1 }
 0x404   :  { %3334 = vsyncpa [#allocation4], 1 }

</bundles_post_ra>
